<compile_context>
chip_gen: v5e
topology: v5e:2x2
jax: 0.10.0
libtpu: 0.0.40
codegen_flags: <defaults>
</compile_context>

<pallas_src>
import math

import jax
import jax.numpy as jnp
from jax import lax
from jax.experimental import pallas as pl
from jax.experimental.pallas import tpu as pltpu

_LANE = 128


def _round_up(x, m):
    return (x + m - 1) // m * m


# --------------------------------------------------------------------------
# Pallas kernel: recurrent core of one LSTM layer.
# --------------------------------------------------------------------------
def _lstm_recurrence_kernel(gx_ref, whh_ref, out_ref, h_scr, c_scr):
    """One grid step == T_BLK timesteps of the serial recurrence.

    gx_ref : [T_BLK, B, 4*Hp] f32   precomputed x_t @ W_ih^T + (b_ih + b_hh)
    whh_ref: [Hp, 4*Hp]       f32   W_hh^T, per-gate blocks lane-aligned
    out_ref: [T_BLK, B, Hp]   f32   hidden state for every timestep
    h_scr  : [B, Hp] f32 VMEM scratch (persists across grid steps)
    c_scr  : [B, Hp] f32 VMEM scratch (persists across grid steps)

    Padded hidden columns (>= H) have all-zero weights and bias, so their gate
    pre-activations are 0 -> i=f=o=0.5, g=0 -> c_pad and h_pad stay exactly 0.
    """
    blk = pl.program_id(0)

    @pl.when(blk == 0)
    def _init():
        h_scr[...] = jnp.zeros_like(h_scr)
        c_scr[...] = jnp.zeros_like(c_scr)

    t_blk = gx_ref.shape[0]
    hp = h_scr.shape[-1]

    whh = whh_ref[...]          # [Hp, 4Hp] f32, resident for the whole block
    h = h_scr[...]              # [B, Hp] f32
    c = c_scr[...]              # [B, Hp] f32

    # Short, fully unrolled serial loop.  Per timestep only the h-recurrence
    # matmul (f32 MXU, f32 accumulation) and the gate math remain on the
    # critical path; the x-side GEMM was hoisted into the wrapper.
    for k in range(t_blk):
        gates = gx_ref[k] + jnp.dot(
            h, whh, preferred_element_type=jnp.float32
        )  # [B, 4Hp], gate slices below are 128-lane aligned

        i_g = jax.nn.sigmoid(gates[:, 0 * hp:1 * hp])
        f_g = jax.nn.sigmoid(gates[:, 1 * hp:2 * hp])
        g_g = jnp.tanh(gates[:, 2 * hp:3 * hp])
        o_g = jax.nn.sigmoid(gates[:, 3 * hp:4 * hp])

        c = f_g * c + i_g * g_g
        h = o_g * jnp.tanh(c)            # tanh(c) computed exactly once
        out_ref[k] = h.astype(out_ref.dtype)

    h_scr[...] = h
    c_scr[...] = c


def _vmem_bytes_estimate(t_blk, b, hp):
    gx = 2 * t_blk * b * 4 * hp * 4      # double-buffered input blocks (f32)
    out = 2 * t_blk * b * hp * 4         # double-buffered output blocks (f32)
    whh = 2 * hp * 4 * hp * 4            # weight tile (2x reserved), f32
    state = 2 * b * hp * 4               # h/c scratch
    return gx + out + whh + state


def lstm_layer_pallas(gates_x, whh_t, t_blk):
    """Run the recurrent part of one LSTM layer.

    gates_x: [T, B, 4*Hp] f32 (time-major), T % t_blk == 0
    whh_t  : [Hp, 4*Hp]   f32
    returns: [T, B, Hp]   f32 (time-major hidden states of every timestep)
    """
    T, B, G = gates_x.shape
    hp = whh_t.shape[0]
    assert G == 4 * hp and T % t_blk == 0
    n_blk = T // t_blk

    vmem_limit = int(min(max(2 * _vmem_bytes_estimate(t_blk, B, hp), 16 << 20),
                         48 << 20))

    return pl.pallas_call(
        _lstm_recurrence_kernel,
        out_shape=jax.ShapeDtypeStruct((T, B, hp), jnp.float32),
        grid_spec=pltpu.PrefetchScalarGridSpec(
            num_scalar_prefetch=0,
            grid=(n_blk,),
            in_specs=[
                # T_BLK-timestep activation block (time-major).
                pl.BlockSpec((t_blk, B, 4 * hp), lambda i: (i, 0, 0)),
                # Constant index_map -> the weight tile is DMA'd once and
                # reused.  For very large H on v7x (64 MiB VMEM) this should
                # additionally be single-buffered / manually DMA'd to scratch.
                pl.BlockSpec((hp, 4 * hp), lambda i: (0, 0)),
            ],
            out_specs=pl.BlockSpec((t_blk, B, hp), lambda i: (i, 0, 0)),
            scratch_shapes=[
                pltpu.VMEM((B, hp), jnp.float32),   # h
                pltpu.VMEM((B, hp), jnp.float32),   # c
            ],
        ),
        compiler_params=pltpu.CompilerParams(
            # Time is inherently serial (h/c carried across grid steps).
            # With a large batch, a leading "parallel" batch axis would be the
            # route to megacore on v7x; B=2 here, so a single serial axis.
            dimension_semantics=("arbitrary",),
            vmem_limit_bytes=vmem_limit,
        ),
    )(gates_x, whh_t)


# --------------------------------------------------------------------------
# Parameters (PyTorch-style init), packed into the padded kernel layout.
# --------------------------------------------------------------------------
def init_lstm_params(key, input_dim, hidden_dim, num_layers):
    """uniform(-1/sqrt(H), 1/sqrt(H)) init, like torch.nn.LSTM.

    Per layer:
      "w_ih_t": [in_dim, 4*Hp] f32  (per-gate blocks lane-aligned, zero-padded)
      "w_hh_t": [Hp, 4*Hp]     f32
      "bias"  : [1, 4*Hp]      f32  (b_ih + b_hh, padded)
      "raw"   : (w_ih, w_hh, b_ih, b_hh) f32 in PyTorch layout (for reference)
    """
    H = hidden_dim
    Hp = _round_up(H, _LANE)
    bound = 1.0 / math.sqrt(H)
    params = []
    for layer in range(num_layers):
        in_dim = input_dim if layer == 0 else H
        in_dim_k = input_dim if layer == 0 else Hp  # kernel-side input width
        key, k1, k2, k3, k4 = jax.random.split(key, 5)
        w_ih = jax.random.uniform(k1, (4 * H, in_dim), minval=-bound,
                                  maxval=bound, dtype=jnp.float32)
        w_hh = jax.random.uniform(k2, (4 * H, H), minval=-bound,
                                  maxval=bound, dtype=jnp.float32)
        b_ih = jax.random.uniform(k3, (4 * H,), minval=-bound,
                                  maxval=bound, dtype=jnp.float32)
        b_hh = jax.random.uniform(k4, (4 * H,), minval=-bound,
                                  maxval=bound, dtype=jnp.float32)

        w_ih_t = jnp.zeros((in_dim_k, 4 * Hp), jnp.float32)
        w_hh_t = jnp.zeros((Hp, 4 * Hp), jnp.float32)
        bias = jnp.zeros((4 * Hp,), jnp.float32)
        for g in range(4):  # PyTorch gate order (i, f, g, o)
            w_ih_t = w_ih_t.at[:in_dim, g * Hp:g * Hp + H].set(
                w_ih[g * H:(g + 1) * H, :].T)
            w_hh_t = w_hh_t.at[:H, g * Hp:g * Hp + H].set(
                w_hh[g * H:(g + 1) * H, :].T)
            bias = bias.at[g * Hp:g * Hp + H].set(
                b_ih[g * H:(g + 1) * H] + b_hh[g * H:(g + 1) * H])

        params.append({
            "w_ih_t": w_ih_t,
            "w_hh_t": w_hh_t,
            "bias": bias[None, :],
            "raw": (w_ih, w_hh, b_ih, b_hh),
        })
    return params


def _choose_t_block(seq_len):
    # Amortize per-grid-step overhead over many timesteps.  For very large
    # B/H this should be re-derived against the per-generation VMEM budget
    # (v7x: 64 MiB physical); at these sizes 8-32 is comfortably small.
    for cand in (32, 16, 8):
        if seq_len >= cand:
            return cand
    return 8


# --------------------------------------------------------------------------
# Full LSTMEncoder.forward: x [B, T, input_dim] -> output [B, T, hidden_dim]
# --------------------------------------------------------------------------
def lstm_encoder_forward(x_btd, params, hidden_dim):
    B, T, _ = x_btd.shape

    t_blk = _choose_t_block(T)
    T_pad = _round_up(T, t_blk)

    x = x_btd.astype(jnp.float32)
    if T_pad != T:
        # Zero-pad trailing timesteps; they run after every real step and are
        # sliced off below, so they cannot affect real outputs.
        x = jnp.pad(x, ((0, 0), (0, T_pad - T), (0, 0)))

    h_tbd = None
    for li, p in enumerate(params):
        # Hoisted input projection: one big GEMM over all timesteps (f32
        # operands, f32 accumulation).  The "...->tbg" output ordering makes
        # the recurrence kernel's blocks time-major without a standalone
        # transpose of the activations; layers chain in time-major layout.
        if li == 0:
            gates_x = jnp.einsum("btd,dg->tbg", x, p["w_ih_t"],
                                 preferred_element_type=jnp.float32)
        else:
            gates_x = jnp.einsum("tbd,dg->tbg", h_tbd, p["w_ih_t"],
                                 preferred_element_type=jnp.float32)
        gates_x = gates_x + p["bias"]                 # [T_pad, B, 4*Hp] f32
        h_tbd = lstm_layer_pallas(gates_x, p["w_hh_t"], t_blk)

    # Back to batch-first; drop time padding and hidden padding.
    return jnp.transpose(h_tbd, (1, 0, 2))[:, :T, :hidden_dim]


# --------------------------------------------------------------------------
# Pure-JAX reference (same math as torch.nn.LSTM) for the correctness check.
# --------------------------------------------------------------------------
def _lstm_reference(x_btd, params, hidden_dim):
    B, _, _ = x_btd.shape
    H = hidden_dim
    h_seq = x_btd.astype(jnp.float32)
    for p in params:
        w_ih, w_hh, b_ih, b_hh = p["raw"]
        wih_t = w_ih.T
        whh_t = w_hh.T
        b = (b_ih + b_hh)[None, :]

        def step(carry, x_t):
            h_prev, c_prev = carry
            gates = (jnp.dot(x_t, wih_t, preferred_element_type=jnp.float32)
                     + jnp.dot(h_prev, whh_t,
                               preferred_element_type=jnp.float32)
                     + b)
            i = jax.nn.sigmoid(gates[:, 0 * H:1 * H])
            f = jax.nn.sigmoid(gates[:, 1 * H:2 * H])
            g = jnp.tanh(gates[:, 2 * H:3 * H])
            o = jax.nn.sigmoid(gates[:, 3 * H:4 * H])
            c = f * c_prev + i * g
            h = o * jnp.tanh(c)
            return (h, c), h

        init = (jnp.zeros((B, H), jnp.float32), jnp.zeros((B, H), jnp.float32))
        _, hs = lax.scan(step, init, jnp.transpose(h_seq, (1, 0, 2)))
        h_seq = jnp.transpose(hs, (1, 0, 2))
    return h_seq


if __name__ == "__main__":
    # Small config consistent with the module's forward:
    #   x: [B, SEQ_LEN, INPUT_DIM], LSTM(input_dim, hidden_dim, num_layers)
    B, T, INPUT_DIM, HIDDEN_DIM, LAYERS = 2, 8, 16, 32, 2

    key = jax.random.PRNGKey(0)
    kx, kp = jax.random.split(key)
    x = jax.random.normal(kx, (B, T, INPUT_DIM), dtype=jnp.float32)
    params = init_lstm_params(kp, INPUT_DIM, HIDDEN_DIM, LAYERS)

    out = jax.block_until_ready(lstm_encoder_forward(x, params, HIDDEN_DIM))
    assert out.shape == (B, T, HIDDEN_DIM), out.shape

    # Check vs. exact f32 PyTorch-LSTM math.  Tolerance allows for the TPU
    # default matmul precision on f32 operands.
    ref = jax.block_until_ready(_lstm_reference(x, params, HIDDEN_DIM))
    err = float(jnp.max(jnp.abs(out - ref)))
    assert err < 5e-3, err

    print("KERNEL_OK")
</pallas_src>

<mosaic_0001>
module attributes {stable_mosaic.version = 11 : i64} {
  func.func @_lstm_recurrence_kernel(%arg0: i32, %arg1: memref<8x2x512xf32, #tpu.memory_space<vmem>>, %arg2: memref<128x512xf32, #tpu.memory_space<vmem>>, %arg3: memref<8x2x128xf32, #tpu.memory_space<vmem>>, %arg4: memref<2x128xf32, #tpu.memory_space<vmem>>, %arg5: memref<2x128xf32, #tpu.memory_space<vmem>>) attributes {dimension_semantics = [#tpu.dimension_semantics<arbitrary>], iteration_bounds = array<i64: 1>, scalar_prefetch = 0 : i64, scratch_operands = 2 : i64, tpu.core_type = #tpu.core_type<tc>, window_params = [{transform_indices = @transform_0, window_bounds = array<i64: 8, 2, 512>}, {pipeline_mode = #tpu.pipeline_mode<synchronous>, transform_indices = @transform_1, window_bounds = array<i64: 128, 512>}, {transform_indices = @transform_2, window_bounds = array<i64: 8, 2, 128>}]} {
    %c0_i32 = arith.constant 0 : i32
    %0 = arith.cmpi eq, %arg0, %c0_i32 : i32
    %1 = arith.extui %0 : i1 to i32
    %c0_i32_0 = arith.constant 0 : i32
    %2 = arith.cmpi ne, %1, %c0_i32_0 : i32
    scf.if %2 {
      %cst_82 = arith.constant 0.000000e+00 : f32
      %264 = vector.broadcast %cst_82 : f32 to vector<2x128xf32>
      %c0_83 = arith.constant 0 : index
      %c0_84 = arith.constant 0 : index
      %265 = vector.load %arg4[%c0_83, %c0_84] : memref<2x128xf32, #tpu.memory_space<vmem>>, vector<2x128xf32>
      tpu.vector_store %arg4[%c0_83, %c0_84], %264 {strides = array<i32>} : memref<2x128xf32, #tpu.memory_space<vmem>>, vector<2x128xf32>,
      %cst_85 = arith.constant 0.000000e+00 : f32
      %266 = vector.broadcast %cst_85 : f32 to vector<2x128xf32>
      %c0_86 = arith.constant 0 : index
      %c0_87 = arith.constant 0 : index
      %267 = vector.load %arg5[%c0_86, %c0_87] : memref<2x128xf32, #tpu.memory_space<vmem>>, vector<2x128xf32>
      tpu.vector_store %arg5[%c0_86, %c0_87], %266 {strides = array<i32>} : memref<2x128xf32, #tpu.memory_space<vmem>>, vector<2x128xf32>,
    } else {
    }
    %c0 = arith.constant 0 : index
    %c0_1 = arith.constant 0 : index
    %3 = vector.load %arg2[%c0, %c0_1] : memref<128x512xf32, #tpu.memory_space<vmem>>, vector<128x512xf32>
    %c0_2 = arith.constant 0 : index
    %c0_3 = arith.constant 0 : index
    %4 = vector.load %arg4[%c0_2, %c0_3] : memref<2x128xf32, #tpu.memory_space<vmem>>, vector<2x128xf32>
    %c0_4 = arith.constant 0 : index
    %c0_5 = arith.constant 0 : index
    %5 = vector.load %arg5[%c0_4, %c0_5] : memref<2x128xf32, #tpu.memory_space<vmem>>, vector<2x128xf32>
    %c0_6 = arith.constant 0 : index
    %c0_7 = arith.constant 0 : index
    %c0_8 = arith.constant 0 : index
    %6 = vector.load %arg1[%c0_6, %c0_7, %c0_8] : memref<8x2x512xf32, #tpu.memory_space<vmem>>, vector<1x2x512xf32>
    %7 = vector.shape_cast %6 : vector<1x2x512xf32> to vector<2x512xf32>
    %cst = arith.constant dense<0.000000e+00> : vector<2x512xf32>
    %8 = tpu.matmul %4, %3, %cst {dimension_numbers = #tpu.dot_dimension_numbers<[1], [0], [0], [1], [0, 0, 1, 1], [], []>} : vector<2x128xf32>, vector<128x512xf32>, vector<2x512xf32> -> vector<2x512xf32>
    %9 = arith.addf %7, %8 : vector<2x512xf32>
    %10 = vector.extract_strided_slice %9 {offsets = [0, 0], sizes = [2, 128], strides = [1, 1]} : vector<2x512xf32> to vector<2x128xf32>
    %11 = arith.negf %10 : vector<2x128xf32>
    %12 = math.exp %11 : vector<2x128xf32>
    %cst_9 = arith.constant 1.000000e+00 : f32
    %13 = vector.broadcast %cst_9 : f32 to vector<2x128xf32>
    %14 = arith.addf %13, %12 : vector<2x128xf32>
    %15 = arith.divf %13, %14 : vector<2x128xf32>
    %16 = vector.extract_strided_slice %9 {offsets = [0, 128], sizes = [2, 128], strides = [1, 1]} : vector<2x512xf32> to vector<2x128xf32>
    %17 = arith.negf %16 : vector<2x128xf32>
    %18 = math.exp %17 : vector<2x128xf32>
    %cst_10 = arith.constant 1.000000e+00 : f32
    %19 = vector.broadcast %cst_10 : f32 to vector<2x128xf32>
    %20 = arith.addf %19, %18 : vector<2x128xf32>
    %21 = arith.divf %19, %20 : vector<2x128xf32>
    %22 = vector.extract_strided_slice %9 {offsets = [0, 256], sizes = [2, 128], strides = [1, 1]} : vector<2x512xf32> to vector<2x128xf32>
    %23 = math.tanh %22 : vector<2x128xf32>
    %24 = vector.extract_strided_slice %9 {offsets = [0, 384], sizes = [2, 128], strides = [1, 1]} : vector<2x512xf32> to vector<2x128xf32>
    %25 = arith.negf %24 : vector<2x128xf32>
    %26 = math.exp %25 : vector<2x128xf32>
    %cst_11 = arith.constant 1.000000e+00 : f32
    %27 = vector.broadcast %cst_11 : f32 to vector<2x128xf32>
    %28 = arith.addf %27, %26 : vector<2x128xf32>
    %29 = arith.divf %27, %28 : vector<2x128xf32>
    %30 = arith.mulf %21, %5 : vector<2x128xf32>
    %31 = arith.mulf %15, %23 : vector<2x128xf32>
    %32 = arith.addf %30, %31 : vector<2x128xf32>
    %33 = math.tanh %32 : vector<2x128xf32>
    %34 = arith.mulf %29, %33 : vector<2x128xf32>
    %c0_12 = arith.constant 0 : index
    %c0_13 = arith.constant 0 : index
    %c0_14 = arith.constant 0 : index
    %35 = vector.load %arg3[%c0_12, %c0_13, %c0_14] : memref<8x2x128xf32, #tpu.memory_space<vmem>>, vector<1x2x128xf32>
    %36 = vector.shape_cast %35 : vector<1x2x128xf32> to vector<2x128xf32>
    %37 = vector.shape_cast %34 : vector<2x128xf32> to vector<1x2x128xf32>
    tpu.vector_store %arg3[%c0_12, %c0_13, %c0_14], %37 {strides = array<i32>} : memref<8x2x128xf32, #tpu.memory_space<vmem>>, vector<1x2x128xf32>,
    %c1 = arith.constant 1 : index
    %c0_15 = arith.constant 0 : index
    %c0_16 = arith.constant 0 : index
    %38 = vector.load %arg1[%c1, %c0_15, %c0_16] : memref<8x2x512xf32, #tpu.memory_space<vmem>>, vector<1x2x512xf32>
    %39 = vector.shape_cast %38 : vector<1x2x512xf32> to vector<2x512xf32>
    %cst_17 = arith.constant dense<0.000000e+00> : vector<2x512xf32>
    %40 = tpu.matmul %34, %3, %cst_17 {dimension_numbers = #tpu.dot_dimension_numbers<[1], [0], [0], [1], [0, 0, 1, 1], [], []>} : vector<2x128xf32>, vector<128x512xf32>, vector<2x512xf32> -> vector<2x512xf32>
    %41 = arith.addf %39, %40 : vector<2x512xf32>
    %42 = vector.extract_strided_slice %41 {offsets = [0, 0], sizes = [2, 128], strides = [1, 1]} : vector<2x512xf32> to vector<2x128xf32>
    %43 = arith.negf %42 : vector<2x128xf32>
    %44 = math.exp %43 : vector<2x128xf32>
    %cst_18 = arith.constant 1.000000e+00 : f32
    %45 = vector.broadcast %cst_18 : f32 to vector<2x128xf32>
    %46 = arith.addf %45, %44 : vector<2x128xf32>
    %47 = arith.divf %45, %46 : vector<2x128xf32>
    %48 = vector.extract_strided_slice %41 {offsets = [0, 128], sizes = [2, 128], strides = [1, 1]} : vector<2x512xf32> to vector<2x128xf32>
    %49 = arith.negf %48 : vector<2x128xf32>
    %50 = math.exp %49 : vector<2x128xf32>
    %cst_19 = arith.constant 1.000000e+00 : f32
    %51 = vector.broadcast %cst_19 : f32 to vector<2x128xf32>
    %52 = arith.addf %51, %50 : vector<2x128xf32>
    %53 = arith.divf %51, %52 : vector<2x128xf32>
    %54 = vector.extract_strided_slice %41 {offsets = [0, 256], sizes = [2, 128], strides = [1, 1]} : vector<2x512xf32> to vector<2x128xf32>
    %55 = math.tanh %54 : vector<2x128xf32>
    %56 = vector.extract_strided_slice %41 {offsets = [0, 384], sizes = [2, 128], strides = [1, 1]} : vector<2x512xf32> to vector<2x128xf32>
    %57 = arith.negf %56 : vector<2x128xf32>
    %58 = math.exp %57 : vector<2x128xf32>
    %cst_20 = arith.constant 1.000000e+00 : f32
    %59 = vector.broadcast %cst_20 : f32 to vector<2x128xf32>
    %60 = arith.addf %59, %58 : vector<2x128xf32>
    %61 = arith.divf %59, %60 : vector<2x128xf32>
    %62 = arith.mulf %53, %32 : vector<2x128xf32>
    %63 = arith.mulf %47, %55 : vector<2x128xf32>
    %64 = arith.addf %62, %63 : vector<2x128xf32>
    %65 = math.tanh %64 : vector<2x128xf32>
    %66 = arith.mulf %61, %65 : vector<2x128xf32>
    %c1_21 = arith.constant 1 : index
    %c0_22 = arith.constant 0 : index
    %c0_23 = arith.constant 0 : index
    %67 = vector.load %arg3[%c1_21, %c0_22, %c0_23] : memref<8x2x128xf32, #tpu.memory_space<vmem>>, vector<1x2x128xf32>
    %68 = vector.shape_cast %67 : vector<1x2x128xf32> to vector<2x128xf32>
    %69 = vector.shape_cast %66 : vector<2x128xf32> to vector<1x2x128xf32>
    tpu.vector_store %arg3[%c1_21, %c0_22, %c0_23], %69 {strides = array<i32>} : memref<8x2x128xf32, #tpu.memory_space<vmem>>, vector<1x2x128xf32>,
    %c2 = arith.constant 2 : index
    %c0_24 = arith.constant 0 : index
    %c0_25 = arith.constant 0 : index
    %70 = vector.load %arg1[%c2, %c0_24, %c0_25] : memref<8x2x512xf32, #tpu.memory_space<vmem>>, vector<1x2x512xf32>
    %71 = vector.shape_cast %70 : vector<1x2x512xf32> to vector<2x512xf32>
    %cst_26 = arith.constant dense<0.000000e+00> : vector<2x512xf32>
    %72 = tpu.matmul %66, %3, %cst_26 {dimension_numbers = #tpu.dot_dimension_numbers<[1], [0], [0], [1], [0, 0, 1, 1], [], []>} : vector<2x128xf32>, vector<128x512xf32>, vector<2x512xf32> -> vector<2x512xf32>
    %73 = arith.addf %71, %72 : vector<2x512xf32>
    %74 = vector.extract_strided_slice %73 {offsets = [0, 0], sizes = [2, 128], strides = [1, 1]} : vector<2x512xf32> to vector<2x128xf32>
    %75 = arith.negf %74 : vector<2x128xf32>
    %76 = math.exp %75 : vector<2x128xf32>
    %cst_27 = arith.constant 1.000000e+00 : f32
    %77 = vector.broadcast %cst_27 : f32 to vector<2x128xf32>
    %78 = arith.addf %77, %76 : vector<2x128xf32>
    %79 = arith.divf %77, %78 : vector<2x128xf32>
    %80 = vector.extract_strided_slice %73 {offsets = [0, 128], sizes = [2, 128], strides = [1, 1]} : vector<2x512xf32> to vector<2x128xf32>
    %81 = arith.negf %80 : vector<2x128xf32>
    %82 = math.exp %81 : vector<2x128xf32>
    %cst_28 = arith.constant 1.000000e+00 : f32
    %83 = vector.broadcast %cst_28 : f32 to vector<2x128xf32>
    %84 = arith.addf %83, %82 : vector<2x128xf32>
    %85 = arith.divf %83, %84 : vector<2x128xf32>
    %86 = vector.extract_strided_slice %73 {offsets = [0, 256], sizes = [2, 128], strides = [1, 1]} : vector<2x512xf32> to vector<2x128xf32>
    %87 = math.tanh %86 : vector<2x128xf32>
    %88 = vector.extract_strided_slice %73 {offsets = [0, 384], sizes = [2, 128], strides = [1, 1]} : vector<2x512xf32> to vector<2x128xf32>
    %89 = arith.negf %88 : vector<2x128xf32>
    %90 = math.exp %89 : vector<2x128xf32>
    %cst_29 = arith.constant 1.000000e+00 : f32
    %91 = vector.broadcast %cst_29 : f32 to vector<2x128xf32>
    %92 = arith.addf %91, %90 : vector<2x128xf32>
    %93 = arith.divf %91, %92 : vector<2x128xf32>
    %94 = arith.mulf %85, %64 : vector<2x128xf32>
    %95 = arith.mulf %79, %87 : vector<2x128xf32>
    %96 = arith.addf %94, %95 : vector<2x128xf32>
    %97 = math.tanh %96 : vector<2x128xf32>
    %98 = arith.mulf %93, %97 : vector<2x128xf32>
    %c2_30 = arith.constant 2 : index
    %c0_31 = arith.constant 0 : index
    %c0_32 = arith.constant 0 : index
    %99 = vector.load %arg3[%c2_30, %c0_31, %c0_32] : memref<8x2x128xf32, #tpu.memory_space<vmem>>, vector<1x2x128xf32>
    %100 = vector.shape_cast %99 : vector<1x2x128xf32> to vector<2x128xf32>
    %101 = vector.shape_cast %98 : vector<2x128xf32> to vector<1x2x128xf32>
    tpu.vector_store %arg3[%c2_30, %c0_31, %c0_32], %101 {strides = array<i32>} : memref<8x2x128xf32, #tpu.memory_space<vmem>>, vector<1x2x128xf32>,
    %c3 = arith.constant 3 : index
    %c0_33 = arith.constant 0 : index
    %c0_34 = arith.constant 0 : index
    %102 = vector.load %arg1[%c3, %c0_33, %c0_34] : memref<8x2x512xf32, #tpu.memory_space<vmem>>, vector<1x2x512xf32>
    %103 = vector.shape_cast %102 : vector<1x2x512xf32> to vector<2x512xf32>
    %cst_35 = arith.constant dense<0.000000e+00> : vector<2x512xf32>
    %104 = tpu.matmul %98, %3, %cst_35 {dimension_numbers = #tpu.dot_dimension_numbers<[1], [0], [0], [1], [0, 0, 1, 1], [], []>} : vector<2x128xf32>, vector<128x512xf32>, vector<2x512xf32> -> vector<2x512xf32>
    %105 = arith.addf %103, %104 : vector<2x512xf32>
    %106 = vector.extract_strided_slice %105 {offsets = [0, 0], sizes = [2, 128], strides = [1, 1]} : vector<2x512xf32> to vector<2x128xf32>
    %107 = arith.negf %106 : vector<2x128xf32>
    %108 = math.exp %107 : vector<2x128xf32>
    %cst_36 = arith.constant 1.000000e+00 : f32
    %109 = vector.broadcast %cst_36 : f32 to vector<2x128xf32>
    %110 = arith.addf %109, %108 : vector<2x128xf32>
    %111 = arith.divf %109, %110 : vector<2x128xf32>
    %112 = vector.extract_strided_slice %105 {offsets = [0, 128], sizes = [2, 128], strides = [1, 1]} : vector<2x512xf32> to vector<2x128xf32>
    %113 = arith.negf %112 : vector<2x128xf32>
    %114 = math.exp %113 : vector<2x128xf32>
    %cst_37 = arith.constant 1.000000e+00 : f32
    %115 = vector.broadcast %cst_37 : f32 to vector<2x128xf32>
    %116 = arith.addf %115, %114 : vector<2x128xf32>
    %117 = arith.divf %115, %116 : vector<2x128xf32>
    %118 = vector.extract_strided_slice %105 {offsets = [0, 256], sizes = [2, 128], strides = [1, 1]} : vector<2x512xf32> to vector<2x128xf32>
    %119 = math.tanh %118 : vector<2x128xf32>
    %120 = vector.extract_strided_slice %105 {offsets = [0, 384], sizes = [2, 128], strides = [1, 1]} : vector<2x512xf32> to vector<2x128xf32>
    %121 = arith.negf %120 : vector<2x128xf32>
    %122 = math.exp %121 : vector<2x128xf32>
    %cst_38 = arith.constant 1.000000e+00 : f32
    %123 = vector.broadcast %cst_38 : f32 to vector<2x128xf32>
    %124 = arith.addf %123, %122 : vector<2x128xf32>
    %125 = arith.divf %123, %124 : vector<2x128xf32>
    %126 = arith.mulf %117, %96 : vector<2x128xf32>
    %127 = arith.mulf %111, %119 : vector<2x128xf32>
    %128 = arith.addf %126, %127 : vector<2x128xf32>
    %129 = math.tanh %128 : vector<2x128xf32>
    %130 = arith.mulf %125, %129 : vector<2x128xf32>
    %c3_39 = arith.constant 3 : index
    %c0_40 = arith.constant 0 : index
    %c0_41 = arith.constant 0 : index
    %131 = vector.load %arg3[%c3_39, %c0_40, %c0_41] : memref<8x2x128xf32, #tpu.memory_space<vmem>>, vector<1x2x128xf32>
    %132 = vector.shape_cast %131 : vector<1x2x128xf32> to vector<2x128xf32>
    %133 = vector.shape_cast %130 : vector<2x128xf32> to vector<1x2x128xf32>
    tpu.vector_store %arg3[%c3_39, %c0_40, %c0_41], %133 {strides = array<i32>} : memref<8x2x128xf32, #tpu.memory_space<vmem>>, vector<1x2x128xf32>,
    %c4 = arith.constant 4 : index
    %c0_42 = arith.constant 0 : index
    %c0_43 = arith.constant 0 : index
    %134 = vector.load %arg1[%c4, %c0_42, %c0_43] : memref<8x2x512xf32, #tpu.memory_space<vmem>>, vector<1x2x512xf32>
    %135 = vector.shape_cast %134 : vector<1x2x512xf32> to vector<2x512xf32>
    %cst_44 = arith.constant dense<0.000000e+00> : vector<2x512xf32>
    %136 = tpu.matmul %130, %3, %cst_44 {dimension_numbers = #tpu.dot_dimension_numbers<[1], [0], [0], [1], [0, 0, 1, 1], [], []>} : vector<2x128xf32>, vector<128x512xf32>, vector<2x512xf32> -> vector<2x512xf32>
    %137 = arith.addf %135, %136 : vector<2x512xf32>
    %138 = vector.extract_strided_slice %137 {offsets = [0, 0], sizes = [2, 128], strides = [1, 1]} : vector<2x512xf32> to vector<2x128xf32>
    %139 = arith.negf %138 : vector<2x128xf32>
    %140 = math.exp %139 : vector<2x128xf32>
    %cst_45 = arith.constant 1.000000e+00 : f32
    %141 = vector.broadcast %cst_45 : f32 to vector<2x128xf32>
    %142 = arith.addf %141, %140 : vector<2x128xf32>
    %143 = arith.divf %141, %142 : vector<2x128xf32>
    %144 = vector.extract_strided_slice %137 {offsets = [0, 128], sizes = [2, 128], strides = [1, 1]} : vector<2x512xf32> to vector<2x128xf32>
    %145 = arith.negf %144 : vector<2x128xf32>
    %146 = math.exp %145 : vector<2x128xf32>
    %cst_46 = arith.constant 1.000000e+00 : f32
    %147 = vector.broadcast %cst_46 : f32 to vector<2x128xf32>
    %148 = arith.addf %147, %146 : vector<2x128xf32>
    %149 = arith.divf %147, %148 : vector<2x128xf32>
    %150 = vector.extract_strided_slice %137 {offsets = [0, 256], sizes = [2, 128], strides = [1, 1]} : vector<2x512xf32> to vector<2x128xf32>
    %151 = math.tanh %150 : vector<2x128xf32>
    %152 = vector.extract_strided_slice %137 {offsets = [0, 384], sizes = [2, 128], strides = [1, 1]} : vector<2x512xf32> to vector<2x128xf32>
    %153 = arith.negf %152 : vector<2x128xf32>
    %154 = math.exp %153 : vector<2x128xf32>
    %cst_47 = arith.constant 1.000000e+00 : f32
    %155 = vector.broadcast %cst_47 : f32 to vector<2x128xf32>
    %156 = arith.addf %155, %154 : vector<2x128xf32>
    %157 = arith.divf %155, %156 : vector<2x128xf32>
    %158 = arith.mulf %149, %128 : vector<2x128xf32>
    %159 = arith.mulf %143, %151 : vector<2x128xf32>
    %160 = arith.addf %158, %159 : vector<2x128xf32>
    %161 = math.tanh %160 : vector<2x128xf32>
    %162 = arith.mulf %157, %161 : vector<2x128xf32>
    %c4_48 = arith.constant 4 : index
    %c0_49 = arith.constant 0 : index
    %c0_50 = arith.constant 0 : index
    %163 = vector.load %arg3[%c4_48, %c0_49, %c0_50] : memref<8x2x128xf32, #tpu.memory_space<vmem>>, vector<1x2x128xf32>
    %164 = vector.shape_cast %163 : vector<1x2x128xf32> to vector<2x128xf32>
    %165 = vector.shape_cast %162 : vector<2x128xf32> to vector<1x2x128xf32>
    tpu.vector_store %arg3[%c4_48, %c0_49, %c0_50], %165 {strides = array<i32>} : memref<8x2x128xf32, #tpu.memory_space<vmem>>, vector<1x2x128xf32>,
    %c5 = arith.constant 5 : index
    %c0_51 = arith.constant 0 : index
    %c0_52 = arith.constant 0 : index
    %166 = vector.load %arg1[%c5, %c0_51, %c0_52] : memref<8x2x512xf32, #tpu.memory_space<vmem>>, vector<1x2x512xf32>
    %167 = vector.shape_cast %166 : vector<1x2x512xf32> to vector<2x512xf32>
    %cst_53 = arith.constant dense<0.000000e+00> : vector<2x512xf32>
    %168 = tpu.matmul %162, %3, %cst_53 {dimension_numbers = #tpu.dot_dimension_numbers<[1], [0], [0], [1], [0, 0, 1, 1], [], []>} : vector<2x128xf32>, vector<128x512xf32>, vector<2x512xf32> -> vector<2x512xf32>
    %169 = arith.addf %167, %168 : vector<2x512xf32>
    %170 = vector.extract_strided_slice %169 {offsets = [0, 0], sizes = [2, 128], strides = [1, 1]} : vector<2x512xf32> to vector<2x128xf32>
    %171 = arith.negf %170 : vector<2x128xf32>
    %172 = math.exp %171 : vector<2x128xf32>
    %cst_54 = arith.constant 1.000000e+00 : f32
    %173 = vector.broadcast %cst_54 : f32 to vector<2x128xf32>
    %174 = arith.addf %173, %172 : vector<2x128xf32>
    %175 = arith.divf %173, %174 : vector<2x128xf32>
    %176 = vector.extract_strided_slice %169 {offsets = [0, 128], sizes = [2, 128], strides = [1, 1]} : vector<2x512xf32> to vector<2x128xf32>
    %177 = arith.negf %176 : vector<2x128xf32>
    %178 = math.exp %177 : vector<2x128xf32>
    %cst_55 = arith.constant 1.000000e+00 : f32
    %179 = vector.broadcast %cst_55 : f32 to vector<2x128xf32>
    %180 = arith.addf %179, %178 : vector<2x128xf32>
    %181 = arith.divf %179, %180 : vector<2x128xf32>
    %182 = vector.extract_strided_slice %169 {offsets = [0, 256], sizes = [2, 128], strides = [1, 1]} : vector<2x512xf32> to vector<2x128xf32>
    %183 = math.tanh %182 : vector<2x128xf32>
    %184 = vector.extract_strided_slice %169 {offsets = [0, 384], sizes = [2, 128], strides = [1, 1]} : vector<2x512xf32> to vector<2x128xf32>
    %185 = arith.negf %184 : vector<2x128xf32>
    %186 = math.exp %185 : vector<2x128xf32>
    %cst_56 = arith.constant 1.000000e+00 : f32
    %187 = vector.broadcast %cst_56 : f32 to vector<2x128xf32>
    %188 = arith.addf %187, %186 : vector<2x128xf32>
    %189 = arith.divf %187, %188 : vector<2x128xf32>
    %190 = arith.mulf %181, %160 : vector<2x128xf32>
    %191 = arith.mulf %175, %183 : vector<2x128xf32>
    %192 = arith.addf %190, %191 : vector<2x128xf32>
    %193 = math.tanh %192 : vector<2x128xf32>
    %194 = arith.mulf %189, %193 : vector<2x128xf32>
    %c5_57 = arith.constant 5 : index
    %c0_58 = arith.constant 0 : index
    %c0_59 = arith.constant 0 : index
    %195 = vector.load %arg3[%c5_57, %c0_58, %c0_59] : memref<8x2x128xf32, #tpu.memory_space<vmem>>, vector<1x2x128xf32>
    %196 = vector.shape_cast %195 : vector<1x2x128xf32> to vector<2x128xf32>
    %197 = vector.shape_cast %194 : vector<2x128xf32> to vector<1x2x128xf32>
    tpu.vector_store %arg3[%c5_57, %c0_58, %c0_59], %197 {strides = array<i32>} : memref<8x2x128xf32, #tpu.memory_space<vmem>>, vector<1x2x128xf32>,
    %c6 = arith.constant 6 : index
    %c0_60 = arith.constant 0 : index
    %c0_61 = arith.constant 0 : index
    %198 = vector.load %arg1[%c6, %c0_60, %c0_61] : memref<8x2x512xf32, #tpu.memory_space<vmem>>, vector<1x2x512xf32>
    %199 = vector.shape_cast %198 : vector<1x2x512xf32> to vector<2x512xf32>
    %cst_62 = arith.constant dense<0.000000e+00> : vector<2x512xf32>
    %200 = tpu.matmul %194, %3, %cst_62 {dimension_numbers = #tpu.dot_dimension_numbers<[1], [0], [0], [1], [0, 0, 1, 1], [], []>} : vector<2x128xf32>, vector<128x512xf32>, vector<2x512xf32> -> vector<2x512xf32>
    %201 = arith.addf %199, %200 : vector<2x512xf32>
    %202 = vector.extract_strided_slice %201 {offsets = [0, 0], sizes = [2, 128], strides = [1, 1]} : vector<2x512xf32> to vector<2x128xf32>
    %203 = arith.negf %202 : vector<2x128xf32>
    %204 = math.exp %203 : vector<2x128xf32>
    %cst_63 = arith.constant 1.000000e+00 : f32
    %205 = vector.broadcast %cst_63 : f32 to vector<2x128xf32>
    %206 = arith.addf %205, %204 : vector<2x128xf32>
    %207 = arith.divf %205, %206 : vector<2x128xf32>
    %208 = vector.extract_strided_slice %201 {offsets = [0, 128], sizes = [2, 128], strides = [1, 1]} : vector<2x512xf32> to vector<2x128xf32>
    %209 = arith.negf %208 : vector<2x128xf32>
    %210 = math.exp %209 : vector<2x128xf32>
    %cst_64 = arith.constant 1.000000e+00 : f32
    %211 = vector.broadcast %cst_64 : f32 to vector<2x128xf32>
    %212 = arith.addf %211, %210 : vector<2x128xf32>
    %213 = arith.divf %211, %212 : vector<2x128xf32>
    %214 = vector.extract_strided_slice %201 {offsets = [0, 256], sizes = [2, 128], strides = [1, 1]} : vector<2x512xf32> to vector<2x128xf32>
    %215 = math.tanh %214 : vector<2x128xf32>
    %216 = vector.extract_strided_slice %201 {offsets = [0, 384], sizes = [2, 128], strides = [1, 1]} : vector<2x512xf32> to vector<2x128xf32>
    %217 = arith.negf %216 : vector<2x128xf32>
    %218 = math.exp %217 : vector<2x128xf32>
    %cst_65 = arith.constant 1.000000e+00 : f32
    %219 = vector.broadcast %cst_65 : f32 to vector<2x128xf32>
    %220 = arith.addf %219, %218 : vector<2x128xf32>
    %221 = arith.divf %219, %220 : vector<2x128xf32>
    %222 = arith.mulf %213, %192 : vector<2x128xf32>
    %223 = arith.mulf %207, %215 : vector<2x128xf32>
    %224 = arith.addf %222, %223 : vector<2x128xf32>
    %225 = math.tanh %224 : vector<2x128xf32>
    %226 = arith.mulf %221, %225 : vector<2x128xf32>
    %c6_66 = arith.constant 6 : index
    %c0_67 = arith.constant 0 : index
    %c0_68 = arith.constant 0 : index
    %227 = vector.load %arg3[%c6_66, %c0_67, %c0_68] : memref<8x2x128xf32, #tpu.memory_space<vmem>>, vector<1x2x128xf32>
    %228 = vector.shape_cast %227 : vector<1x2x128xf32> to vector<2x128xf32>
    %229 = vector.shape_cast %226 : vector<2x128xf32> to vector<1x2x128xf32>
    tpu.vector_store %arg3[%c6_66, %c0_67, %c0_68], %229 {strides = array<i32>} : memref<8x2x128xf32, #tpu.memory_space<vmem>>, vector<1x2x128xf32>,
    %c7 = arith.constant 7 : index
    %c0_69 = arith.constant 0 : index
    %c0_70 = arith.constant 0 : index
    %230 = vector.load %arg1[%c7, %c0_69, %c0_70] : memref<8x2x512xf32, #tpu.memory_space<vmem>>, vector<1x2x512xf32>
    %231 = vector.shape_cast %230 : vector<1x2x512xf32> to vector<2x512xf32>
    %cst_71 = arith.constant dense<0.000000e+00> : vector<2x512xf32>
    %232 = tpu.matmul %226, %3, %cst_71 {dimension_numbers = #tpu.dot_dimension_numbers<[1], [0], [0], [1], [0, 0, 1, 1], [], []>} : vector<2x128xf32>, vector<128x512xf32>, vector<2x512xf32> -> vector<2x512xf32>
    %233 = arith.addf %231, %232 : vector<2x512xf32>
    %234 = vector.extract_strided_slice %233 {offsets = [0, 0], sizes = [2, 128], strides = [1, 1]} : vector<2x512xf32> to vector<2x128xf32>
    %235 = arith.negf %234 : vector<2x128xf32>
    %236 = math.exp %235 : vector<2x128xf32>
    %cst_72 = arith.constant 1.000000e+00 : f32
    %237 = vector.broadcast %cst_72 : f32 to vector<2x128xf32>
    %238 = arith.addf %237, %236 : vector<2x128xf32>
    %239 = arith.divf %237, %238 : vector<2x128xf32>
    %240 = vector.extract_strided_slice %233 {offsets = [0, 128], sizes = [2, 128], strides = [1, 1]} : vector<2x512xf32> to vector<2x128xf32>
    %241 = arith.negf %240 : vector<2x128xf32>
    %242 = math.exp %241 : vector<2x128xf32>
    %cst_73 = arith.constant 1.000000e+00 : f32
    %243 = vector.broadcast %cst_73 : f32 to vector<2x128xf32>
    %244 = arith.addf %243, %242 : vector<2x128xf32>
    %245 = arith.divf %243, %244 : vector<2x128xf32>
    %246 = vector.extract_strided_slice %233 {offsets = [0, 256], sizes = [2, 128], strides = [1, 1]} : vector<2x512xf32> to vector<2x128xf32>
    %247 = math.tanh %246 : vector<2x128xf32>
    %248 = vector.extract_strided_slice %233 {offsets = [0, 384], sizes = [2, 128], strides = [1, 1]} : vector<2x512xf32> to vector<2x128xf32>
    %249 = arith.negf %248 : vector<2x128xf32>
    %250 = math.exp %249 : vector<2x128xf32>
    %cst_74 = arith.constant 1.000000e+00 : f32
    %251 = vector.broadcast %cst_74 : f32 to vector<2x128xf32>
    %252 = arith.addf %251, %250 : vector<2x128xf32>
    %253 = arith.divf %251, %252 : vector<2x128xf32>
    %254 = arith.mulf %245, %224 : vector<2x128xf32>
    %255 = arith.mulf %239, %247 : vector<2x128xf32>
    %256 = arith.addf %254, %255 : vector<2x128xf32>
    %257 = math.tanh %256 : vector<2x128xf32>
    %258 = arith.mulf %253, %257 : vector<2x128xf32>
    %c7_75 = arith.constant 7 : index
    %c0_76 = arith.constant 0 : index
    %c0_77 = arith.constant 0 : index
    %259 = vector.load %arg3[%c7_75, %c0_76, %c0_77] : memref<8x2x128xf32, #tpu.memory_space<vmem>>, vector<1x2x128xf32>
    %260 = vector.shape_cast %259 : vector<1x2x128xf32> to vector<2x128xf32>
    %261 = vector.shape_cast %258 : vector<2x128xf32> to vector<1x2x128xf32>
    tpu.vector_store %arg3[%c7_75, %c0_76, %c0_77], %261 {strides = array<i32>} : memref<8x2x128xf32, #tpu.memory_space<vmem>>, vector<1x2x128xf32>,
    %c0_78 = arith.constant 0 : index
    %c0_79 = arith.constant 0 : index
    %262 = vector.load %arg4[%c0_78, %c0_79] : memref<2x128xf32, #tpu.memory_space<vmem>>, vector<2x128xf32>
    tpu.vector_store %arg4[%c0_78, %c0_79], %258 {strides = array<i32>} : memref<2x128xf32, #tpu.memory_space<vmem>>, vector<2x128xf32>,
    %c0_80 = arith.constant 0 : index
    %c0_81 = arith.constant 0 : index
    %263 = vector.load %arg5[%c0_80, %c0_81] : memref<2x128xf32, #tpu.memory_space<vmem>>, vector<2x128xf32>
    tpu.vector_store %arg5[%c0_80, %c0_81], %256 {strides = array<i32>} : memref<2x128xf32, #tpu.memory_space<vmem>>, vector<2x128xf32>,
    return
  }
  func.func @transform_0(%arg0: i32) -> (i32, i32, i32) {
    %c0_i32 = arith.constant 0 : i32
    %c0_i32_0 = arith.constant 0 : i32
    %c0_i32_1 = arith.constant 0 : i32
    return %arg0, %c0_i32, %c0_i32_0 : i32, i32, i32
  }
  func.func @transform_1(%arg0: i32) -> (i32, i32) {
    %c0_i32 = arith.constant 0 : i32
    %c0_i32_0 = arith.constant 0 : i32
    %c0_i32_1 = arith.constant 0 : i32
    return %c0_i32, %c0_i32_0 : i32, i32
  }
  func.func @transform_2(%arg0: i32) -> (i32, i32, i32) {
    %c0_i32 = arith.constant 0 : i32
    %c0_i32_0 = arith.constant 0 : i32
    %c0_i32_1 = arith.constant 0 : i32
    return %arg0, %c0_i32, %c0_i32_0 : i32, i32, i32
  }
}

</mosaic_0001>

<bundles_post_ra>
// kernel: tpu_custom_call.1
= control target key start
LH: loop header
LB: loop body
LE: loop exit
PB: predicated region body
PF: predicated region fallthrough
CT: control target
= control target key end

     0   :  { %7 = vsyncpa [#allocation5], 0  ;;  %s2626_s0 = inlined_call_operand.hbm [shape: f32[8,2,512], index: 0, kind: input, shape index: {}]   ;;  %s2627_s1 = inlined_call_operand.hbm [shape: f32[128,512], index: 1, kind: input, shape index: {}]   ;;  %s2628_s2 = inlined_call_operand.hbm [shape: f32[8,2,128], index: 2, kind: output, shape index: {}]  }
   0x1   :  { %8 = vsyncpa [#allocation8], 0 }
   0x2   :  { %9 = vsyncpa [#allocation6], 0  ;;  %s14_s11 = sshll.u32 %s2626_s0, 4  ;;  %s1770_s12 = smov [#allocation4]   ;;  %s15_s11 = int_to_ptr.hbm [resolvable:$true] %s14_s11 }
   0x3   :  { %s16_s13 = sshll.u32 %s1770_s12, 4  ;;  %s27_s16 = sshll.u32 %s2627_s1, 4  ;;  %s17_s13 = int_to_ptr.vmem [resolvable:$true] %s16_s13  ;;  %s28_s16 = int_to_ptr.hbm [resolvable:$true] %s27_s16 }
   0x4   :  { %s1771_s17 = smov 128   ;;  %s1772_s18 = smov 8  }
   0x5   :  { %22 = dma.hbm_to_vmem [thread:$0]  %s15_s11, 1024, %s17_s13, [#allocation5], %s1771_s17, %s1771_s17, %s1772_s18  }
   0x6   :  { %s1773_s19 = smov [#allocation7]   ;;  %s1774_s21 = smov 512  }
   0x7   :  { %s29_s20 = sshll.u32 %s1773_s19, 4  ;;  %s1775_s22 = smov 32   ;;  %s30_s20 = int_to_ptr.vmem [resolvable:$true] %s29_s20 }
   0x8   :  { %35 = dma.hbm_to_vmem [thread:$0]  %s28_s16, 8192, %s30_s20, [#allocation8], %s1774_s21, %s1774_s21, %s1775_s22  }
   0x9   :  { %1764 = dma.done.wait [#allocation5], 1024  }
   0xa   :  { %1765 = vsyncadd [#allocation5], 4294966272 }
   0xb   :  { %1766 = dma.done.wait [#allocation8], 8192  }
   0xc   :  { %1767 = vsyncadd [#allocation8], 4294959104  ;;  %v1776_v0 = vmov 0.0   ;;  %v1801_v1 = vld [vmem:[#allocation7 + $0x1f0] sm:$0xff]  ;;  %v1803_v2 = vld [vmem:[#allocation7 + $0x1f8] sm:$0xff]  ;;  %vm204_vm0 = vcmask 1041408  }
   0xd   :  { %48 = vst [vmem:[#allocation2] sm:$0x3] %v1776_v0  ;;  %v1805_v3 = vld [vmem:[#allocation7 + $0x1d0] sm:$0xff]  ;;  %157 = vmatpush.msra.mxu2 %v1801_v1  ;;  %177 = vmatpush.msra.mxu3 %v1803_v2  ;;  %v1809_v4 = vld [vmem:[#allocation7 + $0x1d8] sm:$0xff]  ;;  %v1815_v7 = vld [vmem:[#allocation7 + $0x1e8] sm:$0xff]  ;;  %vm206_vm1 = vcmask 1045508  }
   0xe   :  { %49 = vst [vmem:[#allocation3] sm:$0x3] %v1776_v0  ;;  %v1811_v5 = vld [vmem:[#allocation7 + $0x1b0] sm:$0xff]  ;;  %v1813_v6 = vld [vmem:[#allocation7 + $0x1b8] sm:$0xff]  ;;  %v1819_v8 = vld [vmem:[#allocation7 + $0x1e0] sm:$0xff]  ;;  %137 = vmatpush.msra.mxu1 %v1815_v7  ;;  %vm208_vm2 = vcmask 1043456  }
   0xf   :  { %158 = vmatpush.msra.mxu2 %v1805_v3  ;;  %178 = vmatpush.msra.mxu3 %v1809_v4  ;;  %v1821_v9 = vld [vmem:[#allocation7 + $0x1c8] sm:$0xff]  ;;  %v1824_v10 = vld [vmem:[#allocation7 + $0x190] sm:$0xff]  ;;  %v1826_v11 = vld [vmem:[#allocation7 + $0x198] sm:$0xff]  ;;  %s1777_s0 = smov [#allocation9]   ;;  %s1453_s25 = sshll.u32 %s2628_s2, 4  ;;  %s1454_s25 = int_to_ptr.hbm [resolvable:$true] %s1453_s25 }
  0x10   :  { %117 = vmatpush.msra.mxu0 %v1819_v8  ;;  %v1829_v12 = vld [vmem:[#allocation7 + $0x1c0] sm:$0xff]  ;;  %v1833_v13 = vld [vmem:[#allocation7 + $0x1a8] sm:$0xff]  ;;  %138 = vmatpush.msra.mxu1 %v1821_v9  ;;  %v1838_v15 = vld [vmem:[#allocation7 + $0x170] sm:$0xff]  ;;  %s1451_s1 = sshll.u32 %s1777_s0, 4  ;;  %s1778_s26 = smov 2   ;;  %s1452_s1 = int_to_ptr.vmem [resolvable:$true] %s1451_s1 }
  0x11   :  { %159 = vmatpush.msra.mxu2 %v1811_v5  ;;  %179 = vmatpush.msra.mxu3 %v1813_v6  ;;  %v1835_v14 = vld [vmem:[#allocation7 + $0x1a0] sm:$0xff]  ;;  %v1840_v16 = vld [vmem:[#allocation7 + $0x178] sm:$0xff]  ;;  %v1845_v17 = vld [vmem:[#allocation7 + $0x188] sm:$0xff] }
  0x12   :  { %118 = vmatpush.msra.mxu0 %v1829_v12  ;;  %v1847_v18 = vld [vmem:[#allocation7 + $0x180] sm:$0xff]  ;;  %139 = vmatpush.msra.mxu1 %v1833_v13  ;;  %v1850_v19 = vld [vmem:[#allocation7 + $0x150] sm:$0xff]  ;;  %v1852_v20 = vld [vmem:[#allocation7 + $0x158] sm:$0xff] }
  0x13   :  { %160 = vmatpush.msra.mxu2 %v1824_v10  ;;  %180 = vmatpush.msra.mxu3 %v1826_v11  ;;  %v1857_v21 = vld [vmem:[#allocation7 + $0x168] sm:$0xff]  ;;  %v1859_v22 = vld [vmem:[#allocation7 + $0x160] sm:$0xff]  ;;  %v1862_v23 = vld [vmem:[#allocation7 + $0x130] sm:$0xff] }
  0x14   :  { %119 = vmatpush.msra.mxu0 %v1835_v14  ;;  %140 = vmatpush.msra.mxu1 %v1845_v17  ;;  %v1864_v24 = vld [vmem:[#allocation7 + $0x138] sm:$0xff]  ;;  %v1869_v25 = vld [vmem:[#allocation7 + $0x148] sm:$0xff]  ;;  %v1871_v26 = vld [vmem:[#allocation7 + $0x140] sm:$0xff] }
  0x15   :  { %161 = vmatpush.msra.mxu2 %v1838_v15  ;;  %181 = vmatpush.msra.mxu3 %v1840_v16  ;;  %v1874_v27 = vld [vmem:[#allocation7 + $0x110] sm:$0xff]  ;;  %v1876_v28 = vld [vmem:[#allocation7 + $0x118] sm:$0xff]  ;;  %v1881_v29 = vld [vmem:[#allocation7 + $0x128] sm:$0xff] }
  0x16   :  { %120 = vmatpush.msra.mxu0 %v1847_v18  ;;  %141 = vmatpush.msra.mxu1 %v1857_v21  ;;  %v1883_v30 = vld [vmem:[#allocation7 + $0x120] sm:$0xff]  ;;  %v1886_v31 = vld [vmem:[#allocation7 + $0xf0] sm:$0xff]  ;;  %v1888_v32 = vld [vmem:[#allocation7 + $0xf8] sm:$0xff] }
  0x17   :  { %162 = vmatpush.msra.mxu2 %v1850_v19  ;;  %182 = vmatpush.msra.mxu3 %v1852_v20  ;;  %v1893_v33 = vld [vmem:[#allocation7 + $0x108] sm:$0xff]  ;;  %v1895_v34 = vld [vmem:[#allocation7 + $0x100] sm:$0xff]  ;;  %v1898_v35 = vld [vmem:[#allocation7 + $0xd0] sm:$0xff] }
  0x18   :  { %121 = vmatpush.msra.mxu0 %v1859_v22  ;;  %142 = vmatpush.msra.mxu1 %v1869_v25  ;;  %2738 = vst [vmem:[#allocation13_spill] sm:$0xff] %v1898_v35  ;;  %v1900_v36 = vld [vmem:[#allocation7 + $0xd8] sm:$0xff]  ;;  %v1905_v37 = vld [vmem:[#allocation7 + $0xe8] sm:$0xff]  ;;  %v1907_v38 = vld [vmem:[#allocation7 + $0xe0] sm:$0xff] }
  0x19   :  { %163 = vmatpush.msra.mxu2 %v1862_v23  ;;  %183 = vmatpush.msra.mxu3 %v1864_v24  ;;  %2739 = vst [vmem:[#allocation14_spill] sm:$0xff] %v1900_v36  ;;  %v1910_v39 = vld [vmem:[#allocation7 + $0xb0] sm:$0xff]  ;;  %v1912_v40 = vld [vmem:[#allocation7 + $0xb8] sm:$0xff]  ;;  %v1917_v41 = vld [vmem:[#allocation7 + $0xc8] sm:$0xff] }
  0x1a   :  { %122 = vmatpush.msra.mxu0 %v1871_v26  ;;  %143 = vmatpush.msra.mxu1 %v1881_v29  ;;  %2740 = vst [vmem:[#allocation15_spill] sm:$0xff] %v1910_v39  ;;  %v1919_v42 = vld [vmem:[#allocation7 + $0xc0] sm:$0xff]  ;;  %v1922_v43 = vld [vmem:[#allocation7 + $0x90] sm:$0xff]  ;;  %v1924_v44 = vld [vmem:[#allocation7 + $0x98] sm:$0xff] }
  0x1b   :  { %164 = vmatpush.msra.mxu2 %v1874_v27  ;;  %184 = vmatpush.msra.mxu3 %v1876_v28  ;;  %2741 = vst [vmem:[#allocation16_spill] sm:$0xff] %v1912_v40  ;;  %v1929_v45 = vld [vmem:[#allocation7 + $0xa8] sm:$0xff]  ;;  %v1931_v46 = vld [vmem:[#allocation7 + $0xa0] sm:$0xff]  ;;  %v1934_v47 = vld [vmem:[#allocation7 + $0x70] sm:$0xff] }
  0x1c   :  { %123 = vmatpush.msra.mxu0 %v1883_v30  ;;  %144 = vmatpush.msra.mxu1 %v1893_v33  ;;  %2742 = vst [vmem:[#allocation17_spill] sm:$0xff] %v1917_v41  ;;  %v1936_v48 = vld [vmem:[#allocation7 + $0x78] sm:$0xff]  ;;  %v1941_v49 = vld [vmem:[#allocation7 + $0x88] sm:$0xff]  ;;  %v1943_v50 = vld [vmem:[#allocation7 + $0x80] sm:$0xff] }
  0x1d   :  { %165 = vmatpush.msra.mxu2 %v1886_v31  ;;  %185 = vmatpush.msra.mxu3 %v1888_v32  ;;  %2743 = vst [vmem:[#allocation18_spill] sm:$0xff] %v1922_v43  ;;  %v1946_v51 = vld [vmem:[#allocation7 + $0x50] sm:$0xff]  ;;  %v1948_v52 = vld [vmem:[#allocation7 + $0x58] sm:$0xff]  ;;  %v1953_v53 = vld [vmem:[#allocation7 + $0x68] sm:$0xff] }
  0x1e   :  { %124 = vmatpush.msra.mxu0 %v1895_v34  ;;  %145 = vmatpush.msra.mxu1 %v1905_v37  ;;  %2744 = vst [vmem:[#allocation19_spill] sm:$0xff] %v1924_v44  ;;  %v1955_v54 = vld [vmem:[#allocation7 + $0x60] sm:$0xff]  ;;  %v1958_v55 = vld [vmem:[#allocation7 + $0x30] sm:$0xff]  ;;  %v1960_v56 = vld [vmem:[#allocation7 + $0x38] sm:$0xff] }
  0x1f   :  { %166 = vmatpush.msra.mxu2 %v1898_v35  ;;  %186 = vmatpush.msra.mxu3 %v1900_v36  ;;  %2745 = vst [vmem:[#allocation20_spill] sm:$0xff] %v1929_v45  ;;  %v1965_v57 = vld [vmem:[#allocation7 + $0x48] sm:$0xff]  ;;  %v1967_v58 = vld [vmem:[#allocation7 + $0x40] sm:$0xff]  ;;  %v1970_v59 = vld [vmem:[#allocation7 + $0x10] sm:$0xff] }
  0x20   :  { %125 = vmatpush.msra.mxu0 %v1907_v38  ;;  %2746 = vst [vmem:[#allocation21_spill] sm:$0xff] %v1931_v46  ;;  %146 = vmatpush.msra.mxu1 %v1917_v41  ;;  %v1972_v60 = vld [vmem:[#allocation7 + $0x18] sm:$0xff]  ;;  %v1979_v62 = vld [vmem:[#allocation7 + $0x28] sm:$0xff]  ;;  %v1981_v63 = vld [vmem:[#allocation7 + $0x20] sm:$0xff] }
  0x21   :  { %167 = vmatpush.msra.mxu2 %v1910_v39  ;;  %187 = vmatpush.msra.mxu3 %v1912_v40  ;;  %2747 = vst [vmem:[#allocation22_spill] sm:$0xff] %v1934_v47  ;;  %v114_v61 = vld [vmem:[#allocation2] sm:$0x3]  ;;  %v1985_v0 = vld [vmem:[#allocation7 + $0x8] sm:$0xff] }
  0x22   :  { %2748 = vst [vmem:[#allocation23_spill] sm:$0xff] %v1936_v48  ;;  %126 = vmatpush.msra.mxu0 %v1919_v42  ;;  %147 = vmatpush.msra.mxu1 %v1929_v45 }
  0x23   :  { %168 = vmatpush.msra.mxu2 %v1922_v43  ;;  %188 = vmatpush.msra.mxu3 %v1924_v44  ;;  %2749 = vst [vmem:[#allocation24_spill] sm:$0xff] %v1941_v49 }
  0x24   :  { %2750 = vst [vmem:[#allocation25_spill] sm:$0xff] %v1943_v50  ;;  %127 = vmatpush.msra.mxu0 %v1931_v46  ;;  %148 = vmatpush.msra.mxu1 %v1941_v49 }
  0x25   :  { %2751 = vst [vmem:[#allocation26_spill] sm:$0xff] %v1946_v51  ;;  %169 = vmatpush.msra.mxu2 %v1934_v47  ;;  %189 = vmatpush.msra.mxu3 %v1936_v48 }
  0x26   :  { %2752 = vst [vmem:[#allocation27_spill] sm:$0xff] %v1948_v52  ;;  %128 = vmatpush.msra.mxu0 %v1943_v50  ;;  %149 = vmatpush.msra.mxu1 %v1953_v53 }
  0x27   :  { %2753 = vst [vmem:[#allocation28_spill] sm:$0xff] %v1953_v53  ;;  %170 = vmatpush.msra.mxu2 %v1946_v51  ;;  %190 = vmatpush.msra.mxu3 %v1948_v52 }
  0x28   :  { %2754 = vst [vmem:[#allocation29_spill] sm:$0xff] %v1955_v54  ;;  %129 = vmatpush.msra.mxu0 %v1955_v54  ;;  %150 = vmatpush.msra.mxu1 %v1965_v57 }
  0x29   :  { %2755 = vst [vmem:[#allocation30_spill] sm:$0xff] %v1958_v55  ;;  %171 = vmatpush.msra.mxu2 %v1958_v55  ;;  %191 = vmatpush.msra.mxu3 %v1960_v56  ;;  %v1987_v55 = vld [vmem:[#allocation7] sm:$0xff] }
  0x2a   :  { %2756 = vst [vmem:[#allocation31_spill] sm:$0xff] %v1960_v56  ;;  %130 = vmatpush.msra.mxu0 %v1967_v58  ;;  %151 = vmatpush.msra.mxu1 %v1979_v62 }
  0x2b   :  { %2757 = vst [vmem:[#allocation32_spill] sm:$0xff] %v1965_v57  ;;  %172 = vmatpush.msra.mxu2 %v1970_v59  ;;  %192 = vmatpush.msra.mxu3 %v1972_v60 }
  0x2c   :  { %2758 = vst [vmem:[#allocation33_spill] sm:$0xff] %v1967_v58  ;;  %173 = vmatmul.f32.vlgmr.msra.gmra.mxu2 %v114_v61  ;;  %193 = vmatmul.f32.vlgmr.msra.gmra.mxu3 %v114_v61 }
  0x2d   :  { %2759 = vst [vmem:[#allocation34_spill] sm:$0xff] %v1970_v59  ;;  %131 = vmatpush.msra.mxu0 %v1981_v63  ;;  %325 = vmatpush.msrb.mxu2 %v1801_v1 }
  0x2e   :  { %2760 = vst [vmem:[#allocation35_spill] sm:$0xff] %v1972_v60  ;;  %345 = vmatpush.msrb.mxu3 %v1803_v2  ;;  %152 = vmatpush.msra.mxu1 %v1985_v0 }
  0x2f   :  { %2761 = vst [vmem:[#allocation36_spill] sm:$0xff] %v1979_v62  ;;  %132 = vmatpush.msra.mxu0 %v1987_v55  ;;  %153 = vmatmul.f32.vlgmr.msra.gmra.mxu1 %v114_v61 }
  0x30   :  { %2762 = vst [vmem:[#allocation37_spill] sm:$0xff] %v1981_v63  ;;  %133 = vmatmul.f32.vlgmr.msra.gmra.mxu0 %v114_v61  ;;  %305 = vmatpush.msrb.mxu1 %v1815_v7  ;;  %v2765_v61 = vld [vmem:[#allocation30_spill] sm:$0xff] }
  0x31   :  { %2763 = vst [vmem:[#allocation38_spill] sm:$0xff] %v1985_v0  ;;  %285 = vmatpush.msrb.mxu0 %v1819_v8  ;;  %326 = vmatpush.msrb.mxu2 %v1805_v3 }
  0x32   :  { %2764 = vst [vmem:[#allocation39_spill] sm:$0xff] %v1987_v55  ;;  %346 = vmatpush.msrb.mxu3 %v1809_v4  ;;  %306 = vmatpush.msrb.mxu1 %v1821_v9 }
  0x33   :  { %286 = vmatpush.msrb.mxu0 %v1829_v12  ;;  %327 = vmatpush.msrb.mxu2 %v1811_v5 }
  0x34   :  { %347 = vmatpush.msrb.mxu3 %v1813_v6  ;;  %307 = vmatpush.msrb.mxu1 %v1833_v13 }
  0x35   :  { %287 = vmatpush.msrb.mxu0 %v1835_v14  ;;  %328 = vmatpush.msrb.mxu2 %v1824_v10 }
  0x36   :  { %348 = vmatpush.msrb.mxu3 %v1826_v11  ;;  %308 = vmatpush.msrb.mxu1 %v1845_v17 }
  0x37   :  { %288 = vmatpush.msrb.mxu0 %v1847_v18  ;;  %329 = vmatpush.msrb.mxu2 %v1838_v15 }
  0x38   :  { %349 = vmatpush.msrb.mxu3 %v1840_v16  ;;  %309 = vmatpush.msrb.mxu1 %v1857_v21 }
  0x39   :  { %289 = vmatpush.msrb.mxu0 %v1859_v22  ;;  %330 = vmatpush.msrb.mxu2 %v1850_v19 }
  0x3a   :  { %350 = vmatpush.msrb.mxu3 %v1852_v20  ;;  %310 = vmatpush.msrb.mxu1 %v1869_v25 }
  0x3b   :  { %290 = vmatpush.msrb.mxu0 %v1871_v26  ;;  %331 = vmatpush.msrb.mxu2 %v1862_v23 }
  0x3c   :  { %351 = vmatpush.msrb.mxu3 %v1864_v24  ;;  %311 = vmatpush.msrb.mxu1 %v1881_v29 }
  0x3d   :  { %291 = vmatpush.msrb.mxu0 %v1883_v30  ;;  %332 = vmatpush.msrb.mxu2 %v1874_v27 }
  0x3e   :  { %352 = vmatpush.msrb.mxu3 %v1876_v28  ;;  %312 = vmatpush.msrb.mxu1 %v1893_v33 }
  0x3f   :  { %292 = vmatpush.msrb.mxu0 %v1895_v34  ;;  %333 = vmatpush.msrb.mxu2 %v1886_v31 }
  0x40   :  { %353 = vmatpush.msrb.mxu3 %v1888_v32  ;;  %313 = vmatpush.msrb.mxu1 %v1905_v37 }
  0x41   :  { %293 = vmatpush.msrb.mxu0 %v1907_v38  ;;  %334 = vmatpush.msrb.mxu2 %v1898_v35 }
  0x42   :  { %354 = vmatpush.msrb.mxu3 %v1900_v36  ;;  %314 = vmatpush.msrb.mxu1 %v1917_v41 }
  0x43   :  { %294 = vmatpush.msrb.mxu0 %v1919_v42  ;;  %335 = vmatpush.msrb.mxu2 %v1910_v39 }
  0x44   :  { %355 = vmatpush.msrb.mxu3 %v1912_v40  ;;  %315 = vmatpush.msrb.mxu1 %v1929_v45 }
  0x45   :  { %295 = vmatpush.msrb.mxu0 %v1931_v46  ;;  %336 = vmatpush.msrb.mxu2 %v1922_v43 }
  0x46   :  { %356 = vmatpush.msrb.mxu3 %v1924_v44  ;;  %316 = vmatpush.msrb.mxu1 %v1941_v49 }
  0x47   :  { %296 = vmatpush.msrb.mxu0 %v1943_v50  ;;  %337 = vmatpush.msrb.mxu2 %v1934_v47 }
  0x48   :  { %357 = vmatpush.msrb.mxu3 %v1936_v48  ;;  %317 = vmatpush.msrb.mxu1 %v1953_v53 }
  0x49   :  { %297 = vmatpush.msrb.mxu0 %v1955_v54  ;;  %338 = vmatpush.msrb.mxu2 %v1946_v51 }
  0x4a   :  { %358 = vmatpush.msrb.mxu3 %v1948_v52  ;;  %318 = vmatpush.msrb.mxu1 %v1965_v57 }
  0x4b   :  { %298 = vmatpush.msrb.mxu0 %v1967_v58  ;;  %339 = vmatpush.msrb.mxu2 %v2765_v61 }
  0x4c   :  { %359 = vmatpush.msrb.mxu3 %v1960_v56  ;;  %319 = vmatpush.msrb.mxu1 %v1979_v62 }
  0x4d   :  { %299 = vmatpush.msrb.mxu0 %v1981_v63  ;;  %340 = vmatpush.msrb.mxu2 %v1970_v59 }
  0x4e   :  { %360 = vmatpush.msrb.mxu3 %v1972_v60  ;;  %320 = vmatpush.msrb.mxu1 %v1985_v0 }
  0x4f   :  { %300 = vmatpush.msrb.mxu0 %v1987_v55  ;;  %491 = vmatpush.msra.mxu2 %v1801_v1 }
  0x50   :  { %471 = vmatpush.msra.mxu1 %v1815_v7  ;;  %511 = vmatpush.msra.mxu3 %v1803_v2 }
  0x51   :  { %451 = vmatpush.msra.mxu0 %v1819_v8  ;;  %492 = vmatpush.msra.mxu2 %v1805_v3 }
  0x52   :  { %472 = vmatpush.msra.mxu1 %v1821_v9  ;;  %512 = vmatpush.msra.mxu3 %v1809_v4 }
  0x53   :  { %452 = vmatpush.msra.mxu0 %v1829_v12  ;;  %493 = vmatpush.msra.mxu2 %v1811_v5 }
  0x54   :  { %473 = vmatpush.msra.mxu1 %v1833_v13  ;;  %513 = vmatpush.msra.mxu3 %v1813_v6 }
  0x55   :  { %453 = vmatpush.msra.mxu0 %v1835_v14  ;;  %494 = vmatpush.msra.mxu2 %v1824_v10 }
  0x56   :  { %474 = vmatpush.msra.mxu1 %v1845_v17  ;;  %514 = vmatpush.msra.mxu3 %v1826_v11 }
  0x57   :  { %454 = vmatpush.msra.mxu0 %v1847_v18  ;;  %495 = vmatpush.msra.mxu2 %v1838_v15 }
  0x58   :  { %475 = vmatpush.msra.mxu1 %v1857_v21  ;;  %515 = vmatpush.msra.mxu3 %v1840_v16 }
  0x59   :  { %455 = vmatpush.msra.mxu0 %v1859_v22  ;;  %496 = vmatpush.msra.mxu2 %v1850_v19 }
  0x5a   :  { %476 = vmatpush.msra.mxu1 %v1869_v25  ;;  %516 = vmatpush.msra.mxu3 %v1852_v20 }
  0x5b   :  { %456 = vmatpush.msra.mxu0 %v1871_v26  ;;  %497 = vmatpush.msra.mxu2 %v1862_v23 }
  0x5c   :  { %477 = vmatpush.msra.mxu1 %v1881_v29  ;;  %517 = vmatpush.msra.mxu3 %v1864_v24 }
  0x5d   :  { %457 = vmatpush.msra.mxu0 %v1883_v30  ;;  %498 = vmatpush.msra.mxu2 %v1874_v27 }
  0x5e   :  { %478 = vmatpush.msra.mxu1 %v1893_v33  ;;  %518 = vmatpush.msra.mxu3 %v1876_v28 }
  0x5f   :  { %458 = vmatpush.msra.mxu0 %v1895_v34  ;;  %499 = vmatpush.msra.mxu2 %v1886_v31 }
  0x60   :  { %479 = vmatpush.msra.mxu1 %v1905_v37  ;;  %519 = vmatpush.msra.mxu3 %v1888_v32 }
  0x61   :  { %459 = vmatpush.msra.mxu0 %v1907_v38  ;;  %500 = vmatpush.msra.mxu2 %v1898_v35 }
  0x62   :  { %480 = vmatpush.msra.mxu1 %v1917_v41  ;;  %520 = vmatpush.msra.mxu3 %v1900_v36 }
  0x63   :  { %460 = vmatpush.msra.mxu0 %v1919_v42  ;;  %501 = vmatpush.msra.mxu2 %v1910_v39 }
  0x64   :  { %481 = vmatpush.msra.mxu1 %v1929_v45  ;;  %521 = vmatpush.msra.mxu3 %v1912_v40  ;;  %v115_v45 = vld [vmem:[#allocation3] sm:$0x3] }
  0x65   :  { %461 = vmatpush.msra.mxu0 %v1931_v46  ;;  %502 = vmatpush.msra.mxu2 %v1922_v43 }
  0x66   :  { %482 = vmatpush.msra.mxu1 %v1941_v49  ;;  %522 = vmatpush.msra.mxu3 %v1924_v44 }
  0x67   :  { %462 = vmatpush.msra.mxu0 %v1943_v50  ;;  %503 = vmatpush.msra.mxu2 %v1934_v47 }
  0x68   :  { %483 = vmatpush.msra.mxu1 %v1953_v53  ;;  %523 = vmatpush.msra.mxu3 %v1936_v48 }
  0x69   :  { %463 = vmatpush.msra.mxu0 %v1955_v54  ;;  %504 = vmatpush.msra.mxu2 %v1946_v51 }
  0x6a   :  { %484 = vmatpush.msra.mxu1 %v1965_v57  ;;  %524 = vmatpush.msra.mxu3 %v1948_v52 }
  0x6b   :  { %464 = vmatpush.msra.mxu0 %v1967_v58  ;;  %505 = vmatpush.msra.mxu2 %v2765_v61 }
  0x6c   :  { %485 = vmatpush.msra.mxu1 %v1979_v62  ;;  %525 = vmatpush.msra.mxu3 %v1960_v56  ;;  %v116_v56 = vld [vmem:[#allocation4] sm:$0xff] }
  0x6d   :  { %465 = vmatpush.msra.mxu0 %v1981_v63  ;;  %506 = vmatpush.msra.mxu2 %v1970_v59 }
  0x6e   :  { %486 = vmatpush.msra.mxu1 %v1985_v0  ;;  %526 = vmatpush.msra.mxu3 %v1972_v60 }
  0x6f   :  { %466 = vmatpush.msra.mxu0 %v1987_v55 }
  0xac   :  { %v154_v57 = vpop.f32.mrf.mxu1 }
  0xad   :  { %v134_v51 = vpop.f32.mrf.mxu0  ;;  %v201_v52 = vrot.slane %v154_v57, 6 }
  0xaf   :  { %v174_v58 = vpop.f32.mrf.mxu2  ;;  %v194_v63 = vpop.f32.mrf.mxu3  ;;  %v205_v61 = vsel %vm204_vm0, %v134_v51, %v201_v52 }
  0xb0   :  { %v202_v62 = vrot.slane %v174_v58, 4  ;;  %v203_v48 = vrot.slane %v194_v63, 2 }
  0xb2   :  { %v207_v55 = vsel %vm206_vm1, %v202_v62, %v203_v48 }
  0xb3   :  { %v209_v0 = vsel %vm208_vm2, %v205_v61, %v207_v55 }
  0xb4   :  { %v211_v59 = vadd.f32 %v209_v0, %v116_v56 }
  0xb6   :  { %v1467_v47 = vmul.f32 -1.442695, %v211_v59  ;;  %v232_v60 = vrot.slane %v211_v59, 2  ;;  %v256_v53 = vrot.slane %v211_v59, 6  ;;  %v253_v0 = vrot.slane %v211_v59, 4 }
  0xb8   :  { %1500 = vpow2.f32 %v1467_v47  ;;  %v1468_v54 = vmul.f32 -1.442695, %v232_v60  ;;  %v1469_v57 = vmul.f32 -1.442695, %v256_v53 }
  0xba   :  { %1502 = vpow2.f32 %v1468_v54 }
  0xbb   :  { %1504 = vpow2.f32 %v1469_v57 }
  0xbe   :  { %v1501_v44 = vpop.eup %1500 }
  0xbf   :  { %v215_v58 = vadd.f32 1.0, %v1501_v44 }
  0xc0   :  { %v1503_v63 = vpop.eup %1502 }
  0xc1   :  { %v1505_v43 = vpop.eup %1504  ;;  %1506 = vrcp.f32 %v215_v58  ;;  %v237_v51 = vadd.f32 1.0, %v1503_v63  ;;  %v227_v53 = vand.u32 2147483648, %v215_v58  ;;  %v225_v57 = vand.u32 2147483647, %v215_v58 }
  0xc2   :  { %v261_v52 = vadd.f32 1.0, %v1505_v43  ;;  %vm221_vm4 = vweird.f32 %v215_v58 }
  0xc3   :  { %1508 = vrcp.f32 %v237_v51  ;;  %v249_v50 = vand.u32 2147483648, %v237_v51  ;;  %v247_v63 = vand.u32 2147483647, %v237_v51  ;;  %v228_v39 = vor.u32 1.1754944e-38, %v227_v53  ;;  %v2773_v53 = vld [vmem:[#allocation25_spill] sm:$0xff] }
  0xc4   :  { %1510 = vrcp.f32 %v261_v52  ;;  %vm226_vm7 = vcmp.eq.f32.partialorder %v225_v57, 8.507059e+37  ;;  %vm243_vm8 = vweird.f32 %v237_v51  ;;  %vm267_vm12 = vweird.f32 %v261_v52  ;;  %v2775_v57 = vld [vmem:[#allocation18_spill] sm:$0xff] }
  0xc5   :  { %1512 = vtanh.f32 %v253_v0  ;;  %v250_v46 = vor.u32 1.1754944e-38, %v249_v50  ;;  %vm248_vm10 = vcmp.eq.f32.partialorder %v247_v63, 8.507059e+37  ;;  %v2777_v63 = vld [vmem:[#allocation29_spill] sm:$0xff] }
  0xc7   :  { %v1507_v48 = vpop.eup %1506 }
  0xc8   :  { %v217_v55 = vmul.f32 %v1507_v48, %v215_v58  ;;  %vm222_vm3 = vweird.f32 %v1507_v48 }
  0xc9   :  { %v1509_v56 = vpop.eup %1508  ;;  %vm223_vm5 = vmor %vm221_vm4, %vm222_vm3 }
  0xca   :  { %v218_v62 = vsub.f32 1.0, %v217_v55  ;;  %v1511_v61 = vpop.eup %1510  ;;  %v239_v47 = vmul.f32 %v1509_v56, %v237_v51  ;;  %vm244_vm6 = vweird.f32 %v1509_v56  ;;  %v271_v51 = vand.u32 2147483647, %v261_v52 }
  0xcb   :  { %v263_v54 = vmul.f32 %v1511_v61, %v261_v52  ;;  %vm245_vm9 = vmor %vm243_vm8, %vm244_vm6  ;;  %vm268_vm11 = vweird.f32 %v1511_v61 }
  0xcc   :  { %v219_v60 = vmul.f32 %v1507_v48, %v218_v62  ;;  %v240_v44 = vsub.f32 1.0, %v239_v47  ;;  %v1513_v47 = vpop.eup %1512  ;;  %vm269_vm13 = vmor %vm267_vm12, %vm268_vm11  ;;  %vm272_vm14 = vcmp.eq.f32.partialorder %v271_v51, 8.507059e+37  ;;  %v2786_v51 = vld [vmem:[#allocation36_spill] sm:$0xff] }
  0xcd   :  { %v264_v55 = vsub.f32 1.0, %v263_v54  ;;  %v2774_v54 = vld [vmem:[#allocation24_spill] sm:$0xff] }
  0xce   :  { %v220_v49 = vadd.f32 %v1507_v48, %v219_v60  ;;  %v241_v43 = vmul.f32 %v1509_v56, %v240_v44 }
  0xcf   :  { %v265_v60 = vmul.f32 %v1511_v61, %v264_v55  ;;  %v2778_v55 = vld [vmem:[#allocation28_spill] sm:$0xff] }
  0xd0   :  { %v224_v40 = vsel %vm223_vm5, %v1507_v48, %v220_v49  ;;  %v242_v59 = vadd.f32 %v1509_v56, %v241_v43  ;;  %v273_v49 = vand.u32 2147483648, %v261_v52  ;;  %v2771_v52 = vld [vmem:[#allocation15_spill] sm:$0xff] }
  0xd1   :  { %v229_v62 = vsel %vm226_vm7, %v228_v39, %v224_v40  ;;  %v266_v41 = vadd.f32 %v1511_v61, %v265_v60  ;;  %v2776_v43 = vld [vmem:[#allocation19_spill] sm:$0xff]  ;;  %v2783_v60 = vld [vmem:[#allocation26_spill] sm:$0xff] }
  0xd2   :  { %v246_v36 = vsel %vm245_vm9, %v1509_v56, %v242_v59  ;;  %v278_v0 = vmul.f32 %v1513_v47, %v229_v62  ;;  %v274_v40 = vor.u32 1.1754944e-38, %v273_v49  ;;  %v2779_v59 = vld [vmem:[#allocation22_spill] sm:$0xff]  ;;  %v2780_v62 = vld [vmem:[#allocation23_spill] sm:$0xff]  ;;  %v2781_v47 = vld [vmem:[#allocation33_spill] sm:$0xff] }
  0xd3   :  { %v251_v58 = vsel %vm248_vm10, %v250_v46, %v246_v36  ;;  %v270_v39 = vsel %vm269_vm13, %v1511_v61, %v266_v41  ;;  %v2767_v36 = vld [vmem:[#allocation13_spill] sm:$0xff]  ;;  %v2768_v41 = vld [vmem:[#allocation14_spill] sm:$0xff]  ;;  %v2770_v46 = vld [vmem:[#allocation20_spill] sm:$0xff] }
  0xd4   :  { %v277_v35 = vmul.f32 %v251_v58, %v115_v45  ;;  %v275_v48 = vsel %vm272_vm14, %v274_v40, %v270_v39  ;;  %v2769_v45 = vld [vmem:[#allocation21_spill] sm:$0xff]  ;;  %v2772_v61 = vld [vmem:[#allocation16_spill] sm:$0xff]  ;;  %v2787_v39 = vld [vmem:[#allocation30_spill] sm:$0xff] }
  0xd5   :  { %v2782_v58 = vld [vmem:[#allocation32_spill] sm:$0xff]  ;;  %v2785_v49 = vld [vmem:[#allocation37_spill] sm:$0xff]  ;;  %v2788_v40 = vld [vmem:[#allocation31_spill] sm:$0xff] }
  0xd6   :  { %v2124_v44 = vadd.f32 %v278_v0, %v277_v35  ;;  %v2766_v35 = vld [vmem:[#allocation17_spill] sm:$0xff]  ;;  %v2784_v0 = vld [vmem:[#allocation27_spill] sm:$0xff] }
  0xd8   :  { %1514 = vtanh.f32 %v2124_v44 }
  0xde   :  { %v1515_v50 = vpop.eup %1514 }
  0xdf   :  { %v281_v56 = vmul.f32 %v1515_v50, %v275_v48  ;;  %v2789_v50 = vld [vmem:[#allocation39_spill] sm:$0xff]  ;;  %v2790_v48 = vld [vmem:[#allocation38_spill] sm:$0xff] }
  0xe1   :  { %282 = vst [vmem:[#allocation9] sm:$0x3] %v281_v56  ;;  %301 = vmatmul.f32.vlgmr.msrb.gmra.mxu0 %v281_v56  ;;  %321 = vmatmul.f32.vlgmr.msrb.gmra.mxu1 %v281_v56 }
  0xe2   :  { %341 = vmatmul.f32.vlgmr.msrb.gmra.mxu2 %v281_v56  ;;  %361 = vmatmul.f32.vlgmr.msrb.gmra.mxu3 %v281_v56  ;;  %v2791_v56 = vld [vmem:[#allocation34_spill] sm:$0xff] }
  0xe3   :  { %617 = vmatpush.msrb.mxu0 %v1819_v8  ;;  %637 = vmatpush.msrb.mxu1 %v1815_v7 }
  0xe4   :  { %657 = vmatpush.msrb.mxu2 %v1801_v1  ;;  %677 = vmatpush.msrb.mxu3 %v1803_v2 }
  0xe5   :  { %618 = vmatpush.msrb.mxu0 %v1829_v12  ;;  %638 = vmatpush.msrb.mxu1 %v1821_v9 }
  0xe6   :  { %658 = vmatpush.msrb.mxu2 %v1805_v3  ;;  %678 = vmatpush.msrb.mxu3 %v1809_v4 }
  0xe7   :  { %619 = vmatpush.msrb.mxu0 %v1835_v14  ;;  %639 = vmatpush.msrb.mxu1 %v1833_v13 }
  0xe8   :  { %659 = vmatpush.msrb.mxu2 %v1811_v5  ;;  %679 = vmatpush.msrb.mxu3 %v1813_v6 }
  0xe9   :  { %620 = vmatpush.msrb.mxu0 %v1847_v18  ;;  %640 = vmatpush.msrb.mxu1 %v1845_v17 }
  0xea   :  { %660 = vmatpush.msrb.mxu2 %v1824_v10  ;;  %680 = vmatpush.msrb.mxu3 %v1826_v11 }
  0xeb   :  { %621 = vmatpush.msrb.mxu0 %v1859_v22  ;;  %641 = vmatpush.msrb.mxu1 %v1857_v21 }
  0xec   :  { %661 = vmatpush.msrb.mxu2 %v1838_v15  ;;  %681 = vmatpush.msrb.mxu3 %v1840_v16 }
  0xed   :  { %622 = vmatpush.msrb.mxu0 %v1871_v26  ;;  %642 = vmatpush.msrb.mxu1 %v1869_v25 }
  0xee   :  { %662 = vmatpush.msrb.mxu2 %v1850_v19  ;;  %682 = vmatpush.msrb.mxu3 %v1852_v20 }
  0xef   :  { %623 = vmatpush.msrb.mxu0 %v1883_v30  ;;  %643 = vmatpush.msrb.mxu1 %v1881_v29 }
  0xf0   :  { %663 = vmatpush.msrb.mxu2 %v1862_v23  ;;  %683 = vmatpush.msrb.mxu3 %v1864_v24 }
  0xf1   :  { %624 = vmatpush.msrb.mxu0 %v1895_v34  ;;  %644 = vmatpush.msrb.mxu1 %v1893_v33 }
  0xf2   :  { %664 = vmatpush.msrb.mxu2 %v1874_v27  ;;  %684 = vmatpush.msrb.mxu3 %v1876_v28 }
  0xf3   :  { %625 = vmatpush.msrb.mxu0 %v1907_v38  ;;  %645 = vmatpush.msrb.mxu1 %v1905_v37 }
  0xf4   :  { %665 = vmatpush.msrb.mxu2 %v1886_v31  ;;  %685 = vmatpush.msrb.mxu3 %v1888_v32 }
  0xf5   :  { %626 = vmatpush.msrb.mxu0 %v1919_v42  ;;  %646 = vmatpush.msrb.mxu1 %v2766_v35 }
  0xf6   :  { %666 = vmatpush.msrb.mxu2 %v2767_v36  ;;  %686 = vmatpush.msrb.mxu3 %v2768_v41 }
  0xf7   :  { %627 = vmatpush.msrb.mxu0 %v2769_v45  ;;  %647 = vmatpush.msrb.mxu1 %v2770_v46 }
  0xf8   :  { %667 = vmatpush.msrb.mxu2 %v2771_v52  ;;  %687 = vmatpush.msrb.mxu3 %v2772_v61 }
  0xf9   :  { %628 = vmatpush.msrb.mxu0 %v2773_v53  ;;  %648 = vmatpush.msrb.mxu1 %v2774_v54 }
  0xfa   :  { %668 = vmatpush.msrb.mxu2 %v2775_v57  ;;  %688 = vmatpush.msrb.mxu3 %v2776_v43 }
  0xfb   :  { %629 = vmatpush.msrb.mxu0 %v2777_v63  ;;  %649 = vmatpush.msrb.mxu1 %v2778_v55 }
  0xfc   :  { %669 = vmatpush.msrb.mxu2 %v2779_v59  ;;  %689 = vmatpush.msrb.mxu3 %v2780_v62 }
  0xfd   :  { %630 = vmatpush.msrb.mxu0 %v2781_v47  ;;  %650 = vmatpush.msrb.mxu1 %v2782_v58  ;;  %v2792_v47 = vld [vmem:[#allocation35_spill] sm:$0xff] }
  0xfe   :  { %670 = vmatpush.msrb.mxu2 %v2783_v60  ;;  %690 = vmatpush.msrb.mxu3 %v2784_v0 }
  0xff   :  { %631 = vmatpush.msrb.mxu0 %v2785_v49  ;;  %651 = vmatpush.msrb.mxu1 %v2786_v51  ;;  %v284_v51 = vld [vmem:[#allocation4 + $0x8] sm:$0xff] }
 0x100   :  { %671 = vmatpush.msrb.mxu2 %v2787_v39  ;;  %691 = vmatpush.msrb.mxu3 %v2788_v40 }
 0x101   :  { %632 = vmatpush.msrb.mxu0 %v2789_v50  ;;  %652 = vmatpush.msrb.mxu1 %v2790_v48 }
 0x102   :  { %672 = vmatpush.msrb.mxu2 %v2791_v56  ;;  %692 = vmatpush.msrb.mxu3 %v2792_v47 }
 0x15e   :  { %v322_v58 = vpop.f32.mrf.mxu1  ;;  %v302_v55 = vpop.f32.mrf.mxu0 }
 0x15f   :  { %v369_v60 = vrot.slane %v322_v58, 6 }
 0x161   :  { %v372_v39 = vsel %vm204_vm0, %v302_v55, %v369_v60 }
 0x165   :  { %v342_v62 = vpop.f32.mrf.mxu2  ;;  %v362_v0 = vpop.f32.mrf.mxu3 }
 0x166   :  { %v370_v59 = vrot.slane %v342_v62, 4  ;;  %v371_v49 = vrot.slane %v362_v0, 2 }
 0x168   :  { %v373_v40 = vsel %vm206_vm1, %v370_v59, %v371_v49 }
 0x169   :  { %v374_v50 = vsel %vm208_vm2, %v372_v39, %v373_v40 }
 0x16a   :  { %v376_v63 = vadd.f32 %v374_v50, %v284_v51 }
 0x16c   :  { %v1470_v48 = vmul.f32 -1.442695, %v376_v63  ;;  %v397_v43 = vrot.slane %v376_v63, 2  ;;  %v421_v56 = vrot.slane %v376_v63, 6  ;;  %v418_v51 = vrot.slane %v376_v63, 4 }
 0x16e   :  { %1516 = vpow2.f32 %v1470_v48  ;;  %v1471_v47 = vmul.f32 -1.442695, %v397_v43  ;;  %v1472_v57 = vmul.f32 -1.442695, %v421_v56 }
 0x170   :  { %1518 = vpow2.f32 %v1471_v47 }
 0x171   :  { %1520 = vpow2.f32 %v1472_v57 }
 0x174   :  { %v1517_v58 = vpop.eup %1516 }
 0x175   :  { %v380_v62 = vadd.f32 1.0, %v1517_v58 }
 0x176   :  { %v1519_v0 = vpop.eup %1518 }
 0x177   :  { %v1521_v54 = vpop.eup %1520  ;;  %1522 = vrcp.f32 %v380_v62  ;;  %v402_v53 = vadd.f32 1.0, %v1519_v0  ;;  %v392_v43 = vand.u32 2147483648, %v380_v62  ;;  %v390_v56 = vand.u32 2147483647, %v380_v62 }
 0x178   :  { %v426_v55 = vadd.f32 1.0, %v1521_v54  ;;  %vm386_vm3 = vweird.f32 %v380_v62 }
 0x179   :  { %1524 = vrcp.f32 %v402_v53  ;;  %v414_v58 = vand.u32 2147483648, %v402_v53  ;;  %v412_v61 = vand.u32 2147483647, %v402_v53  ;;  %v393_v52 = vor.u32 1.1754944e-38, %v392_v43 }
 0x17a   :  { %1526 = vrcp.f32 %v426_v55  ;;  %vm391_vm6 = vcmp.eq.f32.partialorder %v390_v56, 8.507059e+37  ;;  %vm408_vm7 = vweird.f32 %v402_v53  ;;  %v438_v43 = vand.u32 2147483648, %v426_v55 }
 0x17b   :  { %1528 = vtanh.f32 %v418_v51  ;;  %vm413_vm9 = vcmp.eq.f32.partialorder %v412_v61, 8.507059e+37  ;;  %vm432_vm11 = vweird.f32 %v426_v55 }
 0x17d   :  { %v1523_v59 = vpop.eup %1522 }
 0x17e   :  { %v382_v60 = vmul.f32 %v1523_v59, %v380_v62  ;;  %vm387_vm15 = vweird.f32 %v1523_v59 }
 0x17f   :  { %v1525_v49 = vpop.eup %1524  ;;  %vm388_vm5 = vmor %vm386_vm3, %vm387_vm15 }
 0x180   :  { %v1527_v39 = vpop.eup %1526  ;;  %v383_v40 = vsub.f32 1.0, %v382_v60  ;;  %v404_v50 = vmul.f32 %v1525_v49, %v402_v53  ;;  %vm409_vm4 = vweird.f32 %v1525_v49  ;;  %v436_v53 = vand.u32 2147483647, %v426_v55 }
 0x181   :  { %v428_v48 = vmul.f32 %v1527_v39, %v426_v55  ;;  %vm410_vm8 = vmor %vm408_vm7, %vm409_vm4  ;;  %v1529_v41 = vpop.eup %1528  ;;  %vm433_vm10 = vweird.f32 %v1527_v39 }
 0x182   :  { %v405_v47 = vsub.f32 1.0, %v404_v50  ;;  %v384_v57 = vmul.f32 %v1523_v59, %v383_v40  ;;  %v415_v50 = vor.u32 1.1754944e-38, %v414_v58  ;;  %vm434_vm12 = vmor %vm432_vm11, %vm433_vm10  ;;  %vm437_vm13 = vcmp.eq.f32.partialorder %v436_v53, 8.507059e+37 }
 0x183   :  { %v429_v46 = vsub.f32 1.0, %v428_v48 }
 0x184   :  { %v385_v0 = vadd.f32 %v1523_v59, %v384_v57  ;;  %v406_v54 = vmul.f32 %v1525_v49, %v405_v47 }
 0x185   :  { %v430_v62 = vmul.f32 %v1527_v39, %v429_v46 }
 0x186   :  { %v389_v63 = vsel %vm388_vm5, %v1523_v59, %v385_v0  ;;  %v407_v60 = vadd.f32 %v1525_v49, %v406_v54  ;;  %v439_v59 = vor.u32 1.1754944e-38, %v438_v43 }
 0x187   :  { %v394_v45 = vsel %vm391_vm6, %v393_v52, %v389_v63  ;;  %v431_v35 = vadd.f32 %v1527_v39, %v430_v62 }
 0x188   :  { %v411_v40 = vsel %vm410_vm8, %v1525_v49, %v407_v60  ;;  %v443_v47 = vmul.f32 %v1529_v41, %v394_v45 }
 0x189   :  { %v416_v51 = vsel %vm413_vm9, %v415_v50, %v411_v40  ;;  %v435_v52 = vsel %vm434_vm12, %v1527_v39, %v431_v35 }
 0x18a   :  { %v442_v57 = vmul.f32 %v416_v51, %v2124_v44  ;;  %v440_v49 = vsel %vm437_vm13, %v439_v59, %v435_v52 }
 0x18c   :  { %v2195_v36 = vadd.f32 %v443_v47, %v442_v57 }
 0x18e   :  { %1530 = vtanh.f32 %v2195_v36 }
 0x194   :  { %v1531_v61 = vpop.eup %1530 }
 0x195   :  { %v446_v48 = vmul.f32 %v1531_v61, %v440_v49 }
 0x197   :  { %448 = vst [vmem:[#allocation9 + $0x2] sm:$0x3] %v446_v48  ;;  %467 = vmatmul.f32.vlgmr.msra.gmra.mxu0 %v446_v48  ;;  %487 = vmatmul.f32.vlgmr.msra.gmra.mxu1 %v446_v48 }
 0x198   :  { %507 = vmatmul.f32.vlgmr.msra.gmra.mxu2 %v446_v48  ;;  %527 = vmatmul.f32.vlgmr.msra.gmra.mxu3 %v446_v48 }
 0x199   :  { %783 = vmatpush.msra.mxu0 %v1819_v8  ;;  %803 = vmatpush.msra.mxu1 %v1815_v7  ;;  %v2799_v7 = vld [vmem:[#allocation16_spill] sm:$0xff]  ;;  %v2800_v8 = vld [vmem:[#allocation25_spill] sm:$0xff] }
 0x19a   :  { %823 = vmatpush.msra.mxu2 %v1801_v1  ;;  %843 = vmatpush.msra.mxu3 %v1803_v2  ;;  %v2793_v1 = vld [vmem:[#allocation17_spill] sm:$0xff] }
 0x19b   :  { %784 = vmatpush.msra.mxu0 %v1829_v12  ;;  %804 = vmatpush.msra.mxu1 %v1821_v9  ;;  %v2794_v2 = vld [vmem:[#allocation13_spill] sm:$0xff]  ;;  %v2801_v9 = vld [vmem:[#allocation24_spill] sm:$0xff] }
 0x19c   :  { %824 = vmatpush.msra.mxu2 %v1805_v3  ;;  %844 = vmatpush.msra.mxu3 %v1809_v4  ;;  %v2795_v3 = vld [vmem:[#allocation14_spill] sm:$0xff]  ;;  %v2796_v4 = vld [vmem:[#allocation21_spill] sm:$0xff] }
 0x19d   :  { %785 = vmatpush.msra.mxu0 %v1835_v14  ;;  %805 = vmatpush.msra.mxu1 %v1833_v13  ;;  %v2804_v12 = vld [vmem:[#allocation29_spill] sm:$0xff]  ;;  %v2805_v13 = vld [vmem:[#allocation28_spill] sm:$0xff]  ;;  %v2806_v14 = vld [vmem:[#allocation22_spill] sm:$0xff] }
 0x19e   :  { %825 = vmatpush.msra.mxu2 %v1811_v5  ;;  %845 = vmatpush.msra.mxu3 %v1813_v6  ;;  %v2797_v5 = vld [vmem:[#allocation20_spill] sm:$0xff]  ;;  %v2798_v6 = vld [vmem:[#allocation15_spill] sm:$0xff] }
 0x19f   :  { %786 = vmatpush.msra.mxu0 %v1847_v18  ;;  %806 = vmatpush.msra.mxu1 %v1845_v17  ;;  %v2809_v17 = vld [vmem:[#allocation32_spill] sm:$0xff]  ;;  %v2810_v18 = vld [vmem:[#allocation26_spill] sm:$0xff] }
 0x1a0   :  { %826 = vmatpush.msra.mxu2 %v1824_v10  ;;  %846 = vmatpush.msra.mxu3 %v1826_v11  ;;  %v2802_v10 = vld [vmem:[#allocation18_spill] sm:$0xff]  ;;  %v2803_v11 = vld [vmem:[#allocation19_spill] sm:$0xff] }
 0x1a1   :  { %787 = vmatpush.msra.mxu0 %v1859_v22  ;;  %807 = vmatpush.msra.mxu1 %v1857_v21  ;;  %v2813_v21 = vld [vmem:[#allocation36_spill] sm:$0xff]  ;;  %v2814_v22 = vld [vmem:[#allocation30_spill] sm:$0xff] }
 0x1a2   :  { %827 = vmatpush.msra.mxu2 %v1838_v15  ;;  %847 = vmatpush.msra.mxu3 %v1840_v16  ;;  %v2807_v15 = vld [vmem:[#allocation23_spill] sm:$0xff]  ;;  %v2808_v16 = vld [vmem:[#allocation33_spill] sm:$0xff] }
 0x1a3   :  { %788 = vmatpush.msra.mxu0 %v1871_v26  ;;  %808 = vmatpush.msra.mxu1 %v1869_v25  ;;  %v2817_v25 = vld [vmem:[#allocation38_spill] sm:$0xff] }
 0x1a4   :  { %828 = vmatpush.msra.mxu2 %v1850_v19  ;;  %848 = vmatpush.msra.mxu3 %v1852_v20  ;;  %v2811_v19 = vld [vmem:[#allocation27_spill] sm:$0xff]  ;;  %v2812_v20 = vld [vmem:[#allocation37_spill] sm:$0xff]  ;;  %v2818_v26 = vld [vmem:[#allocation34_spill] sm:$0xff] }
 0x1a5   :  { %789 = vmatpush.msra.mxu0 %v1883_v30  ;;  %809 = vmatpush.msra.mxu1 %v1881_v29 }
 0x1a6   :  { %829 = vmatpush.msra.mxu2 %v1862_v23  ;;  %849 = vmatpush.msra.mxu3 %v1864_v24  ;;  %v2815_v23 = vld [vmem:[#allocation31_spill] sm:$0xff] }
 0x1a7   :  { %790 = vmatpush.msra.mxu0 %v1895_v34  ;;  %810 = vmatpush.msra.mxu1 %v1893_v33  ;;  %v2816_v24 = vld [vmem:[#allocation39_spill] sm:$0xff] }
 0x1a8   :  { %830 = vmatpush.msra.mxu2 %v1874_v27  ;;  %850 = vmatpush.msra.mxu3 %v1876_v28  ;;  %v2819_v27 = vld [vmem:[#allocation35_spill] sm:$0xff] }
 0x1a9   :  { %791 = vmatpush.msra.mxu0 %v1907_v38  ;;  %811 = vmatpush.msra.mxu1 %v1905_v37  ;;  %v450_v37 = vld [vmem:[#allocation4 + $0x10] sm:$0xff] }
 0x1aa   :  { %831 = vmatpush.msra.mxu2 %v1886_v31  ;;  %851 = vmatpush.msra.mxu3 %v1888_v32 }
 0x1ab   :  { %792 = vmatpush.msra.mxu0 %v1919_v42  ;;  %812 = vmatpush.msra.mxu1 %v2793_v1 }
 0x1ac   :  { %832 = vmatpush.msra.mxu2 %v2794_v2  ;;  %852 = vmatpush.msra.mxu3 %v2795_v3 }
 0x1ad   :  { %793 = vmatpush.msra.mxu0 %v2796_v4  ;;  %813 = vmatpush.msra.mxu1 %v2797_v5 }
 0x1ae   :  { %833 = vmatpush.msra.mxu2 %v2798_v6  ;;  %853 = vmatpush.msra.mxu3 %v2799_v7 }
 0x1af   :  { %794 = vmatpush.msra.mxu0 %v2800_v8  ;;  %814 = vmatpush.msra.mxu1 %v2801_v9 }
 0x1b0   :  { %834 = vmatpush.msra.mxu2 %v2802_v10  ;;  %854 = vmatpush.msra.mxu3 %v2803_v11 }
 0x1b1   :  { %795 = vmatpush.msra.mxu0 %v2804_v12  ;;  %815 = vmatpush.msra.mxu1 %v2805_v13 }
 0x1b2   :  { %835 = vmatpush.msra.mxu2 %v2806_v14  ;;  %855 = vmatpush.msra.mxu3 %v2807_v15 }
 0x1b3   :  { %796 = vmatpush.msra.mxu0 %v2808_v16  ;;  %816 = vmatpush.msra.mxu1 %v2809_v17 }
 0x1b4   :  { %836 = vmatpush.msra.mxu2 %v2810_v18  ;;  %856 = vmatpush.msra.mxu3 %v2811_v19 }
 0x1b5   :  { %797 = vmatpush.msra.mxu0 %v2812_v20  ;;  %817 = vmatpush.msra.mxu1 %v2813_v21 }
 0x1b6   :  { %837 = vmatpush.msra.mxu2 %v2814_v22  ;;  %857 = vmatpush.msra.mxu3 %v2815_v23 }
 0x1b7   :  { %798 = vmatpush.msra.mxu0 %v2816_v24  ;;  %818 = vmatpush.msra.mxu1 %v2817_v25  ;;  %v2272_v25 = vld [vmem:[#allocation7 + $0x1e8] sm:$0xff] }
 0x1b8   :  { %838 = vmatpush.msra.mxu2 %v2818_v26  ;;  %858 = vmatpush.msra.mxu3 %v2819_v27  ;;  %v2275_v26 = vld [vmem:[#allocation7 + $0x1f0] sm:$0xff]  ;;  %v2278_v27 = vld [vmem:[#allocation7 + $0x1f8] sm:$0xff] }
 0x214   :  { %v488_v28 = vpop.f32.mrf.mxu1  ;;  %v468_v34 = vpop.f32.mrf.mxu0 }
 0x215   :  { %v535_v29 = vrot.slane %v488_v28, 6  ;;  %v2281_v28 = vld [vmem:[#allocation7 + $0x1c0] sm:$0xff] }
 0x217   :  { %v538_v38 = vsel %vm204_vm0, %v468_v34, %v535_v29  ;;  %v2284_v29 = vld [vmem:[#allocation7 + $0x1c8] sm:$0xff]  ;;  %v2299_v34 = vld [vmem:[#allocation7 + $0x1b0] sm:$0xff] }
 0x21b   :  { %v508_v30 = vpop.f32.mrf.mxu2  ;;  %v528_v31 = vpop.f32.mrf.mxu3 }
 0x21c   :  { %v536_v32 = vrot.slane %v508_v30, 4  ;;  %v537_v33 = vrot.slane %v528_v31, 2  ;;  %v2287_v30 = vld [vmem:[#allocation7 + $0x1d0] sm:$0xff]  ;;  %v2290_v31 = vld [vmem:[#allocation7 + $0x1d8] sm:$0xff] }
 0x21e   :  { %v539_v42 = vsel %vm206_vm1, %v536_v32, %v537_v33  ;;  %v2293_v32 = vld [vmem:[#allocation7 + $0x1a0] sm:$0xff]  ;;  %v2296_v33 = vld [vmem:[#allocation7 + $0x1a8] sm:$0xff] }
 0x21f   :  { %v540_v44 = vsel %vm208_vm2, %v538_v38, %v539_v42  ;;  %v2305_v38 = vld [vmem:[#allocation7 + $0x180] sm:$0xff]  ;;  %v2308_v42 = vld [vmem:[#allocation7 + $0x188] sm:$0xff] }
 0x220   :  { %v542_v35 = vadd.f32 %v540_v44, %v450_v37  ;;  %v2302_v37 = vld [vmem:[#allocation7 + $0x1b8] sm:$0xff]  ;;  %v2311_v44 = vld [vmem:[#allocation7 + $0x190] sm:$0xff] }
 0x222   :  { %v1473_v41 = vmul.f32 -1.442695, %v542_v35  ;;  %v563_v45 = vrot.slane %v542_v35, 2  ;;  %v587_v46 = vrot.slane %v542_v35, 6  ;;  %v584_v62 = vrot.slane %v542_v35, 4  ;;  %v2314_v35 = vld [vmem:[#allocation7 + $0x198] sm:$0xff] }
 0x224   :  { %1532 = vpow2.f32 %v1473_v41  ;;  %v1474_v55 = vmul.f32 -1.442695, %v563_v45  ;;  %v1475_v39 = vmul.f32 -1.442695, %v587_v46  ;;  %v2317_v41 = vld [vmem:[#allocation7 + $0x160] sm:$0xff]  ;;  %v2320_v45 = vld [vmem:[#allocation7 + $0x168] sm:$0xff] }
 0x225   :  { %v2323_v46 = vld [vmem:[#allocation7 + $0x170] sm:$0xff] }
 0x226   :  { %1534 = vpow2.f32 %v1474_v55  ;;  %v2326_v55 = vld [vmem:[#allocation7 + $0x178] sm:$0xff] }
 0x227   :  { %1536 = vpow2.f32 %v1475_v39  ;;  %v2329_v39 = vld [vmem:[#allocation7 + $0x140] sm:$0xff] }
 0x22a   :  { %v1533_v56 = vpop.eup %1532 }
 0x22b   :  { %v546_v58 = vadd.f32 1.0, %v1533_v56  ;;  %v2332_v56 = vld [vmem:[#allocation7 + $0x148] sm:$0xff] }
 0x22c   :  { %v1535_v0 = vpop.eup %1534 }
 0x22d   :  { %v1537_v54 = vpop.eup %1536  ;;  %1538 = vrcp.f32 %v546_v58  ;;  %v568_v63 = vadd.f32 1.0, %v1535_v0  ;;  %v558_v53 = vand.u32 2147483648, %v546_v58  ;;  %v556_v49 = vand.u32 2147483647, %v546_v58  ;;  %v2338_v0 = vld [vmem:[#allocation7 + $0x158] sm:$0xff] }
 0x22e   :  { %v592_v60 = vadd.f32 1.0, %v1537_v54  ;;  %vm552_vm15 = vweird.f32 %v546_v58  ;;  %v2341_v54 = vld [vmem:[#allocation7 + $0x120] sm:$0xff] }
 0x22f   :  { %1540 = vrcp.f32 %v568_v63  ;;  %v580_v48 = vand.u32 2147483648, %v568_v63  ;;  %v578_v3 = vand.u32 2147483647, %v568_v63  ;;  %v559_v4 = vor.u32 1.1754944e-38, %v558_v53  ;;  %v2371_v53 = vld [vmem:[#allocation7 + $0xf0] sm:$0xff] }
 0x230   :  { %1542 = vrcp.f32 %v592_v60  ;;  %vm557_vm5 = vcmp.eq.f32.partialorder %v556_v49, 8.507059e+37  ;;  %vm574_vm6 = vweird.f32 %v568_v63  ;;  %v604_v18 = vand.u32 2147483648, %v592_v60  ;;  %v2383_v49 = vld [vmem:[#allocation7 + $0xd0] sm:$0xff] }
 0x231   :  { %1544 = vtanh.f32 %v584_v62  ;;  %v581_v9 = vor.u32 1.1754944e-38, %v580_v48  ;;  %vm579_vm8 = vcmp.eq.f32.partialorder %v578_v3, 8.507059e+37  ;;  %vm598_vm10 = vweird.f32 %v592_v60  ;;  %v2359_v62 = vld [vmem:[#allocation7 + $0x110] sm:$0xff]  ;;  %2821 = vst [vmem:[#allocation13_spill] sm:$0xff] %v2383_v49  ;;  %v2386_v48 = vld [vmem:[#allocation7 + $0xd8] sm:$0xff] }
 0x232   :  { %v602_v19 = vand.u32 2147483647, %v592_v60  ;;  %v605_v21 = vor.u32 1.1754944e-38, %v604_v18  ;;  %2822 = vst [vmem:[#allocation14_spill] sm:$0xff] %v2386_v48  ;;  %v2395_v3 = vld [vmem:[#allocation7 + $0xb0] sm:$0xff]  ;;  %v2437_v18 = vld [vmem:[#allocation7 + $0x20] sm:$0xff] }
 0x233   :  { %v1539_v50 = vpop.eup %1538  ;;  %2825 = vst [vmem:[#allocation15_spill] sm:$0xff] %v2395_v3 }
 0x234   :  { %v548_v40 = vmul.f32 %v1539_v50, %v546_v58  ;;  %vm553_vm14 = vweird.f32 %v1539_v50  ;;  %vm603_vm12 = vcmp.eq.f32.partialorder %v602_v19, 8.507059e+37  ;;  %v2335_v58 = vld [vmem:[#allocation7 + $0x150] sm:$0xff]  ;;  %2839 = vst [vmem:[#allocation37_spill] sm:$0xff] %v2437_v18  ;;  %v2440_v19 = vld [vmem:[#allocation7 + $0x28] sm:$0xff] }
 0x235   :  { %v1541_v51 = vpop.eup %1540  ;;  %vm554_vm4 = vmor %vm552_vm15, %vm553_vm14  ;;  %2840 = vst [vmem:[#allocation36_spill] sm:$0xff] %v2440_v19 }
 0x236   :  { %v1543_v57 = vpop.eup %1542  ;;  %v549_v47 = vsub.f32 1.0, %v548_v40  ;;  %v570_v43 = vmul.f32 %v1541_v51, %v568_v63  ;;  %vm575_vm3 = vweird.f32 %v1541_v51  ;;  %v2344_v63 = vld [vmem:[#allocation7 + $0x128] sm:$0xff]  ;;  %v2353_v40 = vld [vmem:[#allocation7 + $0x100] sm:$0xff] }
 0x237   :  { %v594_v52 = vmul.f32 %v1543_v57, %v592_v60  ;;  %vm576_vm7 = vmor %vm574_vm6, %vm575_vm3  ;;  %v1545_v11 = vpop.eup %1544  ;;  %vm599_vm9 = vweird.f32 %v1543_v57  ;;  %v2347_v60 = vld [vmem:[#allocation7 + $0x130] sm:$0xff] }
 0x238   :  { %v571_v59 = vsub.f32 1.0, %v570_v43  ;;  %v550_v61 = vmul.f32 %v1539_v50, %v549_v47  ;;  %vm600_vm11 = vmor %vm598_vm10, %vm599_vm9  ;;  %v2365_v47 = vld [vmem:[#allocation7 + $0xe0] sm:$0xff]  ;;  %v2368_v43 = vld [vmem:[#allocation7 + $0xe8] sm:$0xff] }
 0x239   :  { %v595_v5 = vsub.f32 1.0, %v594_v52  ;;  %v2374_v52 = vld [vmem:[#allocation7 + $0xf8] sm:$0xff] }
 0x23a   :  { %v551_v1 = vadd.f32 %v1539_v50, %v550_v61  ;;  %v572_v2 = vmul.f32 %v1541_v51, %v571_v59  ;;  %v2377_v59 = vld [vmem:[#allocation7 + $0xc0] sm:$0xff]  ;;  %v2380_v61 = vld [vmem:[#allocation7 + $0xc8] sm:$0xff] }
 0x23b   :  { %v596_v13 = vmul.f32 %v1543_v57, %v595_v5  ;;  %2820 = vst [vmem:[#allocation17_spill] sm:$0xff] %v2380_v61  ;;  %v2401_v5 = vld [vmem:[#allocation7 + $0x80] sm:$0xff] }
 0x23c   :  { %v555_v6 = vsel %vm554_vm4, %v1539_v50, %v551_v1  ;;  %v573_v7 = vadd.f32 %v1541_v51, %v572_v2  ;;  %v2350_v50 = vld [vmem:[#allocation7 + $0x138] sm:$0xff]  ;;  %v2389_v1 = vld [vmem:[#allocation7 + $0xa0] sm:$0xff]  ;;  %v2392_v2 = vld [vmem:[#allocation7 + $0xa8] sm:$0xff]  ;;  %2827 = vst [vmem:[#allocation25_spill] sm:$0xff] %v2401_v5 }
 0x23d   :  { %v560_v8 = vsel %vm557_vm5, %v559_v4, %v555_v6  ;;  %v597_v17 = vadd.f32 %v1543_v57, %v596_v13  ;;  %2823 = vst [vmem:[#allocation21_spill] sm:$0xff] %v2389_v1  ;;  %v2398_v4 = vld [vmem:[#allocation7 + $0xb8] sm:$0xff]  ;;  %v2404_v6 = vld [vmem:[#allocation7 + $0x88] sm:$0xff]  ;;  %v2425_v13 = vld [vmem:[#allocation7 + $0x40] sm:$0xff] }
 0x23e   :  { %v577_v10 = vsel %vm576_vm7, %v1541_v51, %v573_v7  ;;  %v609_v15 = vmul.f32 %v1545_v11, %v560_v8  ;;  %v2356_v51 = vld [vmem:[#allocation7 + $0x108] sm:$0xff]  ;;  %2824 = vst [vmem:[#allocation20_spill] sm:$0xff] %v2392_v2  ;;  %v2407_v7 = vld [vmem:[#allocation7 + $0x90] sm:$0xff]  ;;  %v2410_v8 = vld [vmem:[#allocation7 + $0x98] sm:$0xff] }
 0x23f   :  { %v582_v12 = vsel %vm579_vm8, %v581_v9, %v577_v10  ;;  %v601_v20 = vsel %vm600_vm11, %v1543_v57, %v597_v17  ;;  %v2362_v57 = vld [vmem:[#allocation7 + $0x118] sm:$0xff]  ;;  %2826 = vst [vmem:[#allocation16_spill] sm:$0xff] %v2398_v4  ;;  %v2413_v9 = vld [vmem:[#allocation7 + $0x60] sm:$0xff]  ;;  %v2416_v10 = vld [vmem:[#allocation7 + $0x68] sm:$0xff] }
 0x240   :  { %v608_v14 = vmul.f32 %v582_v12, %v2195_v36  ;;  %v606_v23 = vsel %vm603_vm12, %v605_v21, %v601_v20  ;;  %v2269_v36 = vld [vmem:[#allocation7 + $0x1e0] sm:$0xff]  ;;  %2828 = vst [vmem:[#allocation24_spill] sm:$0xff] %v2404_v6  ;;  %v2419_v11 = vld [vmem:[#allocation7 + $0x70] sm:$0xff]  ;;  %v2422_v12 = vld [vmem:[#allocation7 + $0x78] sm:$0xff] }
 0x241   :  { %2829 = vst [vmem:[#allocation18_spill] sm:$0xff] %v2407_v7  ;;  %v2434_v17 = vld [vmem:[#allocation7 + $0x58] sm:$0xff]  ;;  %v2443_v20 = vld [vmem:[#allocation7 + $0x30] sm:$0xff] }
 0x242   :  { %v2266_v16 = vadd.f32 %v609_v15, %v608_v14  ;;  %2830 = vst [vmem:[#allocation19_spill] sm:$0xff] %v2410_v8  ;;  %v2428_v14 = vld [vmem:[#allocation7 + $0x48] sm:$0xff]  ;;  %v2431_v15 = vld [vmem:[#allocation7 + $0x50] sm:$0xff]  ;;  %v2446_v21 = vld [vmem:[#allocation7 + $0x38] sm:$0xff] }
 0x243   :  { %2831 = vst [vmem:[#allocation29_spill] sm:$0xff] %v2413_v9 }
 0x244   :  { %1546 = vtanh.f32 %v2266_v16  ;;  %2832 = vst [vmem:[#allocation28_spill] sm:$0xff] %v2416_v10 }
 0x245   :  { %2833 = vst [vmem:[#allocation22_spill] sm:$0xff] %v2419_v11 }
 0x246   :  { %2834 = vst [vmem:[#allocation23_spill] sm:$0xff] %v2422_v12 }
 0x247   :  { %2835 = vst [vmem:[#allocation33_spill] sm:$0xff] %v2425_v13 }
 0x248   :  { %2836 = vst [vmem:[#allocation32_spill] sm:$0xff] %v2428_v14 }
 0x249   :  { %2837 = vst [vmem:[#allocation26_spill] sm:$0xff] %v2431_v15 }
 0x24a   :  { %v1547_v22 = vpop.eup %1546  ;;  %2838 = vst [vmem:[#allocation27_spill] sm:$0xff] %v2434_v17 }
 0x24b   :  { %v612_v24 = vmul.f32 %v1547_v22, %v606_v23  ;;  %2841 = vst [vmem:[#allocation30_spill] sm:$0xff] %v2443_v20  ;;  %v2449_v22 = vld [vmem:[#allocation7] sm:$0xff]  ;;  %v2452_v23 = vld [vmem:[#allocation7 + $0x8] sm:$0xff] }
 0x24c   :  { %2842 = vst [vmem:[#allocation31_spill] sm:$0xff] %v2446_v21 }
 0x24d   :  { %614 = vst [vmem:[#allocation9 + $0x4] sm:$0x3] %v612_v24  ;;  %633 = vmatmul.f32.vlgmr.msrb.gmra.mxu0 %v612_v24  ;;  %653 = vmatmul.f32.vlgmr.msrb.gmra.mxu1 %v612_v24 }
 0x24e   :  { %673 = vmatmul.f32.vlgmr.msrb.gmra.mxu2 %v612_v24  ;;  %693 = vmatmul.f32.vlgmr.msrb.gmra.mxu3 %v612_v24  ;;  %2843 = vst [vmem:[#allocation39_spill] sm:$0xff] %v2449_v22  ;;  %v2455_v24 = vld [vmem:[#allocation7 + $0x10] sm:$0xff] }
 0x24f   :  { %949 = vmatpush.msrb.mxu0 %v2269_v36  ;;  %969 = vmatpush.msrb.mxu1 %v2272_v25  ;;  %2844 = vst [vmem:[#allocation38_spill] sm:$0xff] %v2452_v23 }
 0x250   :  { %989 = vmatpush.msrb.mxu2 %v2275_v26  ;;  %1009 = vmatpush.msrb.mxu3 %v2278_v27  ;;  %2845 = vst [vmem:[#allocation34_spill] sm:$0xff] %v2455_v24 }
 0x251   :  { %950 = vmatpush.msrb.mxu0 %v2281_v28  ;;  %970 = vmatpush.msrb.mxu1 %v2284_v29 }
 0x252   :  { %990 = vmatpush.msrb.mxu2 %v2287_v30  ;;  %1010 = vmatpush.msrb.mxu3 %v2290_v31 }
 0x253   :  { %951 = vmatpush.msrb.mxu0 %v2293_v32  ;;  %971 = vmatpush.msrb.mxu1 %v2296_v33 }
 0x254   :  { %991 = vmatpush.msrb.mxu2 %v2299_v34  ;;  %1011 = vmatpush.msrb.mxu3 %v2302_v37 }
 0x255   :  { %952 = vmatpush.msrb.mxu0 %v2305_v38  ;;  %972 = vmatpush.msrb.mxu1 %v2308_v42 }
 0x256   :  { %992 = vmatpush.msrb.mxu2 %v2311_v44  ;;  %1012 = vmatpush.msrb.mxu3 %v2314_v35 }
 0x257   :  { %953 = vmatpush.msrb.mxu0 %v2317_v41  ;;  %973 = vmatpush.msrb.mxu1 %v2320_v45 }
 0x258   :  { %993 = vmatpush.msrb.mxu2 %v2323_v46  ;;  %1013 = vmatpush.msrb.mxu3 %v2326_v55 }
 0x259   :  { %954 = vmatpush.msrb.mxu0 %v2329_v39  ;;  %974 = vmatpush.msrb.mxu1 %v2332_v56 }
 0x25a   :  { %994 = vmatpush.msrb.mxu2 %v2335_v58  ;;  %1014 = vmatpush.msrb.mxu3 %v2338_v0 }
 0x25b   :  { %955 = vmatpush.msrb.mxu0 %v2341_v54  ;;  %975 = vmatpush.msrb.mxu1 %v2344_v63 }
 0x25c   :  { %995 = vmatpush.msrb.mxu2 %v2347_v60  ;;  %1015 = vmatpush.msrb.mxu3 %v2350_v50 }
 0x25d   :  { %956 = vmatpush.msrb.mxu0 %v2353_v40  ;;  %976 = vmatpush.msrb.mxu1 %v2356_v51 }
 0x25e   :  { %996 = vmatpush.msrb.mxu2 %v2359_v62  ;;  %1016 = vmatpush.msrb.mxu3 %v2362_v57 }
 0x25f   :  { %957 = vmatpush.msrb.mxu0 %v2365_v47  ;;  %977 = vmatpush.msrb.mxu1 %v2368_v43 }
 0x260   :  { %997 = vmatpush.msrb.mxu2 %v2371_v53  ;;  %1017 = vmatpush.msrb.mxu3 %v2374_v52 }
 0x261   :  { %958 = vmatpush.msrb.mxu0 %v2377_v59  ;;  %978 = vmatpush.msrb.mxu1 %v2380_v61 }
 0x262   :  { %998 = vmatpush.msrb.mxu2 %v2383_v49  ;;  %1018 = vmatpush.msrb.mxu3 %v2386_v48 }
 0x263   :  { %959 = vmatpush.msrb.mxu0 %v2389_v1  ;;  %979 = vmatpush.msrb.mxu1 %v2392_v2 }
 0x264   :  { %999 = vmatpush.msrb.mxu2 %v2395_v3  ;;  %1019 = vmatpush.msrb.mxu3 %v2398_v4 }
 0x265   :  { %960 = vmatpush.msrb.mxu0 %v2401_v5  ;;  %980 = vmatpush.msrb.mxu1 %v2404_v6 }
 0x266   :  { %1000 = vmatpush.msrb.mxu2 %v2407_v7  ;;  %1020 = vmatpush.msrb.mxu3 %v2410_v8 }
 0x267   :  { %961 = vmatpush.msrb.mxu0 %v2413_v9  ;;  %981 = vmatpush.msrb.mxu1 %v2416_v10 }
 0x268   :  { %1001 = vmatpush.msrb.mxu2 %v2419_v11  ;;  %1021 = vmatpush.msrb.mxu3 %v2422_v12 }
 0x269   :  { %962 = vmatpush.msrb.mxu0 %v2425_v13  ;;  %982 = vmatpush.msrb.mxu1 %v2428_v14 }
 0x26a   :  { %1002 = vmatpush.msrb.mxu2 %v2431_v15  ;;  %1022 = vmatpush.msrb.mxu3 %v2434_v17 }
 0x26b   :  { %963 = vmatpush.msrb.mxu0 %v2437_v18  ;;  %983 = vmatpush.msrb.mxu1 %v2440_v19  ;;  %v2458_v19 = vld [vmem:[#allocation7 + $0x18] sm:$0xff] }
 0x26c   :  { %1003 = vmatpush.msrb.mxu2 %v2443_v20  ;;  %1023 = vmatpush.msrb.mxu3 %v2446_v21  ;;  %2846 = vst [vmem:[#allocation35_spill] sm:$0xff] %v2458_v19 }
 0x26d   :  { %964 = vmatpush.msrb.mxu0 %v2449_v22  ;;  %984 = vmatpush.msrb.mxu1 %v2452_v23  ;;  %v616_v22 = vld [vmem:[#allocation4 + $0x18] sm:$0xff] }
 0x26e   :  { %1004 = vmatpush.msrb.mxu2 %v2455_v24  ;;  %1024 = vmatpush.msrb.mxu3 %v2458_v19 }
 0x2ca   :  { %v654_v20 = vpop.f32.mrf.mxu1  ;;  %v634_v13 = vpop.f32.mrf.mxu0 }
 0x2cb   :  { %v701_v18 = vrot.slane %v654_v20, 6 }
 0x2cd   :  { %v704_v12 = vsel %vm204_vm0, %v634_v13, %v701_v18 }
 0x2d1   :  { %v674_v17 = vpop.f32.mrf.mxu2  ;;  %v694_v21 = vpop.f32.mrf.mxu3 }
 0x2d2   :  { %v702_v15 = vrot.slane %v674_v17, 4  ;;  %v703_v14 = vrot.slane %v694_v21, 2 }
 0x2d4   :  { %v705_v23 = vsel %vm206_vm1, %v702_v15, %v703_v14 }
 0x2d5   :  { %v706_v11 = vsel %vm208_vm2, %v704_v12, %v705_v23 }
 0x2d6   :  { %v708_v10 = vadd.f32 %v706_v11, %v616_v22 }
 0x2d8   :  { %v1476_v24 = vmul.f32 -1.442695, %v708_v10  ;;  %v729_v9 = vrot.slane %v708_v10, 2  ;;  %v753_v8 = vrot.slane %v708_v10, 6  ;;  %v750_v15 = vrot.slane %v708_v10, 4 }
 0x2da   :  { %1548 = vpow2.f32 %v1476_v24  ;;  %v1477_v19 = vmul.f32 -1.442695, %v729_v9  ;;  %v1478_v7 = vmul.f32 -1.442695, %v753_v8 }
 0x2dc   :  { %1550 = vpow2.f32 %v1477_v19 }
 0x2dd   :  { %1552 = vpow2.f32 %v1478_v7 }
 0x2e0   :  { %v1549_v20 = vpop.eup %1548 }
 0x2e1   :  { %v712_v17 = vadd.f32 1.0, %v1549_v20 }
 0x2e2   :  { %v1551_v21 = vpop.eup %1550 }
 0x2e3   :  { %v1553_v6 = vpop.eup %1552  ;;  %1554 = vrcp.f32 %v712_v17  ;;  %v734_v5 = vadd.f32 1.0, %v1551_v21  ;;  %v724_v9 = vand.u32 2147483648, %v712_v17  ;;  %v722_v24 = vand.u32 2147483647, %v712_v17 }
 0x2e4   :  { %v758_v13 = vadd.f32 1.0, %v1553_v6  ;;  %vm718_vm14 = vweird.f32 %v712_v17 }
 0x2e5   :  { %1556 = vrcp.f32 %v734_v5  ;;  %v746_v20 = vand.u32 2147483648, %v734_v5  ;;  %v744_v4 = vand.u32 2147483647, %v734_v5  ;;  %v725_v3 = vor.u32 1.1754944e-38, %v724_v9 }
 0x2e6   :  { %1558 = vrcp.f32 %v758_v13  ;;  %vm723_vm4 = vcmp.eq.f32.partialorder %v722_v24, 8.507059e+37  ;;  %vm740_vm5 = vweird.f32 %v734_v5  ;;  %v770_v9 = vand.u32 2147483648, %v758_v13  ;;  %v2854_v24 = vld [vmem:[#allocation25_spill] sm:$0xff] }
 0x2e7   :  { %1560 = vtanh.f32 %v750_v15  ;;  %vm745_vm7 = vcmp.eq.f32.partialorder %v744_v4, 8.507059e+37  ;;  %vm764_vm9 = vweird.f32 %v758_v13 }
 0x2e9   :  { %v1555_v14 = vpop.eup %1554 }
 0x2ea   :  { %v714_v12 = vmul.f32 %v1555_v14, %v712_v17  ;;  %vm719_vm13 = vweird.f32 %v1555_v14 }
 0x2eb   :  { %v1557_v11 = vpop.eup %1556  ;;  %vm720_vm3 = vmor %vm718_vm14, %vm719_vm13 }
 0x2ec   :  { %v1559_v18 = vpop.eup %1558  ;;  %v715_v22 = vsub.f32 1.0, %v714_v12  ;;  %v736_v23 = vmul.f32 %v1557_v11, %v734_v5  ;;  %vm741_vm15 = vweird.f32 %v1557_v11  ;;  %v768_v5 = vand.u32 2147483647, %v758_v13 }
 0x2ed   :  { %v760_v8 = vmul.f32 %v1559_v18, %v758_v13  ;;  %vm742_vm6 = vmor %vm740_vm5, %vm741_vm15  ;;  %v1561_v48 = vpop.eup %1560  ;;  %vm765_vm8 = vweird.f32 %v1559_v18  ;;  %v2852_v13 = vld [vmem:[#allocation15_spill] sm:$0xff] }
 0x2ee   :  { %v737_v19 = vsub.f32 1.0, %v736_v23  ;;  %v716_v7 = vmul.f32 %v1555_v14, %v715_v22  ;;  %v747_v23 = vor.u32 1.1754944e-38, %v746_v20  ;;  %vm766_vm10 = vmor %vm764_vm9, %vm765_vm8  ;;  %vm769_vm11 = vcmp.eq.f32.partialorder %v768_v5, 8.507059e+37  ;;  %v2855_v20 = vld [vmem:[#allocation24_spill] sm:$0xff] }
 0x2ef   :  { %v761_v2 = vsub.f32 1.0, %v760_v8  ;;  %v2867_v5 = vld [vmem:[#allocation36_spill] sm:$0xff] }
 0x2f0   :  { %v717_v21 = vadd.f32 %v1555_v14, %v716_v7  ;;  %v738_v6 = vmul.f32 %v1557_v11, %v737_v19 }
 0x2f1   :  { %v762_v17 = vmul.f32 %v1559_v18, %v761_v2  ;;  %v2851_v2 = vld [vmem:[#allocation20_spill] sm:$0xff] }
 0x2f2   :  { %v721_v10 = vsel %vm720_vm3, %v1555_v14, %v717_v21  ;;  %v739_v12 = vadd.f32 %v1557_v11, %v738_v6  ;;  %v771_v14 = vor.u32 1.1754944e-38, %v770_v9  ;;  %v2856_v21 = vld [vmem:[#allocation18_spill] sm:$0xff]  ;;  %v2857_v6 = vld [vmem:[#allocation19_spill] sm:$0xff]  ;;  %v2866_v9 = vld [vmem:[#allocation37_spill] sm:$0xff] }
 0x2f3   :  { %v726_v1 = vsel %vm723_vm4, %v725_v3, %v721_v10  ;;  %v763_v61 = vadd.f32 %v1559_v18, %v762_v17  ;;  %v2858_v10 = vld [vmem:[#allocation29_spill] sm:$0xff]  ;;  %v2863_v17 = vld [vmem:[#allocation32_spill] sm:$0xff] }
 0x2f4   :  { %v743_v22 = vsel %vm742_vm6, %v1557_v11, %v739_v12  ;;  %v775_v19 = vmul.f32 %v1561_v48, %v726_v1  ;;  %v2849_v48 = vld [vmem:[#allocation14_spill] sm:$0xff]  ;;  %v2850_v1 = vld [vmem:[#allocation21_spill] sm:$0xff]  ;;  %v2859_v12 = vld [vmem:[#allocation28_spill] sm:$0xff] }
 0x2f5   :  { %v748_v15 = vsel %vm745_vm7, %v747_v23, %v743_v22  ;;  %v767_v3 = vsel %vm766_vm10, %v1559_v18, %v763_v61  ;;  %v2848_v61 = vld [vmem:[#allocation13_spill] sm:$0xff]  ;;  %v2853_v18 = vld [vmem:[#allocation16_spill] sm:$0xff]  ;;  %v2860_v23 = vld [vmem:[#allocation22_spill] sm:$0xff] }
 0x2f6   :  { %v774_v7 = vmul.f32 %v748_v15, %v2266_v16  ;;  %v772_v11 = vsel %vm769_vm11, %v771_v14, %v767_v3  ;;  %v2847_v16 = vld [vmem:[#allocation17_spill] sm:$0xff]  ;;  %v2861_v22 = vld [vmem:[#allocation23_spill] sm:$0xff]  ;;  %v2868_v3 = vld [vmem:[#allocation30_spill] sm:$0xff] }
 0x2f7   :  { %v2862_v15 = vld [vmem:[#allocation33_spill] sm:$0xff]  ;;  %v2869_v14 = vld [vmem:[#allocation31_spill] sm:$0xff] }
 0x2f8   :  { %v2465_v49 = vadd.f32 %v775_v19, %v774_v7  ;;  %v2864_v7 = vld [vmem:[#allocation26_spill] sm:$0xff]  ;;  %v2865_v19 = vld [vmem:[#allocation27_spill] sm:$0xff] }
 0x2fa   :  { %1562 = vtanh.f32 %v2465_v49 }
 0x300   :  { %v1563_v4 = vpop.eup %1562 }
 0x301   :  { %v778_v8 = vmul.f32 %v1563_v4, %v772_v11  ;;  %v2870_v4 = vld [vmem:[#allocation39_spill] sm:$0xff]  ;;  %v2871_v11 = vld [vmem:[#allocation38_spill] sm:$0xff] }
 0x303   :  { %780 = vst [vmem:[#allocation9 + $0x6] sm:$0x3] %v778_v8  ;;  %799 = vmatmul.f32.vlgmr.msra.gmra.mxu0 %v778_v8  ;;  %819 = vmatmul.f32.vlgmr.msra.gmra.mxu1 %v778_v8 }
 0x304   :  { %839 = vmatmul.f32.vlgmr.msra.gmra.mxu2 %v778_v8  ;;  %859 = vmatmul.f32.vlgmr.msra.gmra.mxu3 %v778_v8  ;;  %v2872_v8 = vld [vmem:[#allocation34_spill] sm:$0xff] }
 0x305   :  { %1115 = vmatpush.msra.mxu0 %v2269_v36  ;;  %1135 = vmatpush.msra.mxu1 %v2272_v25 }
 0x306   :  { %1155 = vmatpush.msra.mxu2 %v2275_v26  ;;  %1175 = vmatpush.msra.mxu3 %v2278_v27 }
 0x307   :  { %1116 = vmatpush.msra.mxu0 %v2281_v28  ;;  %1136 = vmatpush.msra.mxu1 %v2284_v29 }
 0x308   :  { %1156 = vmatpush.msra.mxu2 %v2287_v30  ;;  %1176 = vmatpush.msra.mxu3 %v2290_v31 }
 0x309   :  { %1117 = vmatpush.msra.mxu0 %v2293_v32  ;;  %1137 = vmatpush.msra.mxu1 %v2296_v33 }
 0x30a   :  { %1157 = vmatpush.msra.mxu2 %v2299_v34  ;;  %1177 = vmatpush.msra.mxu3 %v2302_v37 }
 0x30b   :  { %1118 = vmatpush.msra.mxu0 %v2305_v38  ;;  %1138 = vmatpush.msra.mxu1 %v2308_v42 }
 0x30c   :  { %1158 = vmatpush.msra.mxu2 %v2311_v44  ;;  %1178 = vmatpush.msra.mxu3 %v2314_v35 }
 0x30d   :  { %1119 = vmatpush.msra.mxu0 %v2317_v41  ;;  %1139 = vmatpush.msra.mxu1 %v2320_v45 }
 0x30e   :  { %1159 = vmatpush.msra.mxu2 %v2323_v46  ;;  %1179 = vmatpush.msra.mxu3 %v2326_v55 }
 0x30f   :  { %1120 = vmatpush.msra.mxu0 %v2329_v39  ;;  %1140 = vmatpush.msra.mxu1 %v2332_v56 }
 0x310   :  { %1160 = vmatpush.msra.mxu2 %v2335_v58  ;;  %1180 = vmatpush.msra.mxu3 %v2338_v0 }
 0x311   :  { %1121 = vmatpush.msra.mxu0 %v2341_v54  ;;  %1141 = vmatpush.msra.mxu1 %v2344_v63 }
 0x312   :  { %1161 = vmatpush.msra.mxu2 %v2347_v60  ;;  %1181 = vmatpush.msra.mxu3 %v2350_v50 }
 0x313   :  { %1122 = vmatpush.msra.mxu0 %v2353_v40  ;;  %1142 = vmatpush.msra.mxu1 %v2356_v51 }
 0x314   :  { %1162 = vmatpush.msra.mxu2 %v2359_v62  ;;  %1182 = vmatpush.msra.mxu3 %v2362_v57 }
 0x315   :  { %1123 = vmatpush.msra.mxu0 %v2365_v47  ;;  %1143 = vmatpush.msra.mxu1 %v2368_v43 }
 0x316   :  { %1163 = vmatpush.msra.mxu2 %v2371_v53  ;;  %1183 = vmatpush.msra.mxu3 %v2374_v52 }
 0x317   :  { %1124 = vmatpush.msra.mxu0 %v2377_v59  ;;  %1144 = vmatpush.msra.mxu1 %v2847_v16 }
 0x318   :  { %1164 = vmatpush.msra.mxu2 %v2848_v61  ;;  %1184 = vmatpush.msra.mxu3 %v2849_v48 }
 0x319   :  { %1125 = vmatpush.msra.mxu0 %v2850_v1  ;;  %1145 = vmatpush.msra.mxu1 %v2851_v2 }
 0x31a   :  { %1165 = vmatpush.msra.mxu2 %v2852_v13  ;;  %1185 = vmatpush.msra.mxu3 %v2853_v18 }
 0x31b   :  { %1126 = vmatpush.msra.mxu0 %v2854_v24  ;;  %1146 = vmatpush.msra.mxu1 %v2855_v20 }
 0x31c   :  { %1166 = vmatpush.msra.mxu2 %v2856_v21  ;;  %1186 = vmatpush.msra.mxu3 %v2857_v6 }
 0x31d   :  { %1127 = vmatpush.msra.mxu0 %v2858_v10  ;;  %1147 = vmatpush.msra.mxu1 %v2859_v12 }
 0x31e   :  { %1167 = vmatpush.msra.mxu2 %v2860_v23  ;;  %1187 = vmatpush.msra.mxu3 %v2861_v22 }
 0x31f   :  { %1128 = vmatpush.msra.mxu0 %v2862_v15  ;;  %1148 = vmatpush.msra.mxu1 %v2863_v17  ;;  %v2873_v15 = vld [vmem:[#allocation35_spill] sm:$0xff] }
 0x320   :  { %1168 = vmatpush.msra.mxu2 %v2864_v7  ;;  %1188 = vmatpush.msra.mxu3 %v2865_v19 }
 0x321   :  { %1129 = vmatpush.msra.mxu0 %v2866_v9  ;;  %1149 = vmatpush.msra.mxu1 %v2867_v5  ;;  %v782_v5 = vld [vmem:[#allocation4 + $0x20] sm:$0xff] }
 0x322   :  { %1169 = vmatpush.msra.mxu2 %v2868_v3  ;;  %1189 = vmatpush.msra.mxu3 %v2869_v14 }
 0x323   :  { %1130 = vmatpush.msra.mxu0 %v2870_v4  ;;  %1150 = vmatpush.msra.mxu1 %v2871_v11 }
 0x324   :  { %1170 = vmatpush.msra.mxu2 %v2872_v8  ;;  %1190 = vmatpush.msra.mxu3 %v2873_v15 }
 0x380   :  { %v820_v17 = vpop.f32.mrf.mxu1  ;;  %v800_v12 = vpop.f32.mrf.mxu0 }
 0x381   :  { %v867_v7 = vrot.slane %v820_v17, 6 }
 0x383   :  { %v870_v3 = vsel %vm204_vm0, %v800_v12, %v867_v7 }
 0x387   :  { %v840_v22 = vpop.f32.mrf.mxu2  ;;  %v860_v19 = vpop.f32.mrf.mxu3 }
 0x388   :  { %v868_v23 = vrot.slane %v840_v22, 4  ;;  %v869_v9 = vrot.slane %v860_v19, 2 }
 0x38a   :  { %v871_v14 = vsel %vm206_vm1, %v868_v23, %v869_v9 }
 0x38b   :  { %v872_v4 = vsel %vm208_vm2, %v870_v3, %v871_v14 }
 0x38c   :  { %v874_v10 = vadd.f32 %v872_v4, %v782_v5 }
 0x38e   :  { %v1479_v11 = vmul.f32 -1.442695, %v874_v10  ;;  %v895_v6 = vrot.slane %v874_v10, 2  ;;  %v919_v8 = vrot.slane %v874_v10, 6  ;;  %v916_v5 = vrot.slane %v874_v10, 4 }
 0x390   :  { %1564 = vpow2.f32 %v1479_v11  ;;  %v1480_v15 = vmul.f32 -1.442695, %v895_v6  ;;  %v1481_v21 = vmul.f32 -1.442695, %v919_v8 }
 0x392   :  { %1566 = vpow2.f32 %v1480_v15 }
 0x393   :  { %1568 = vpow2.f32 %v1481_v21 }
 0x396   :  { %v1565_v17 = vpop.eup %1564 }
 0x397   :  { %v878_v22 = vadd.f32 1.0, %v1565_v17 }
 0x398   :  { %v1567_v19 = vpop.eup %1566 }
 0x399   :  { %v1569_v20 = vpop.eup %1568  ;;  %1570 = vrcp.f32 %v878_v22  ;;  %v900_v24 = vadd.f32 1.0, %v1567_v19  ;;  %v890_v6 = vand.u32 2147483648, %v878_v22  ;;  %v888_v8 = vand.u32 2147483647, %v878_v22 }
 0x39a   :  { %v924_v12 = vadd.f32 1.0, %v1569_v20  ;;  %vm884_vm13 = vweird.f32 %v878_v22 }
 0x39b   :  { %1572 = vrcp.f32 %v900_v24  ;;  %v912_v17 = vand.u32 2147483648, %v900_v24  ;;  %v910_v18 = vand.u32 2147483647, %v900_v24  ;;  %v891_v13 = vor.u32 1.1754944e-38, %v890_v6 }
 0x39c   :  { %1574 = vrcp.f32 %v924_v12  ;;  %vm889_vm3 = vcmp.eq.f32.partialorder %v888_v8, 8.507059e+37  ;;  %vm906_vm4 = vweird.f32 %v900_v24  ;;  %v936_v6 = vand.u32 2147483648, %v924_v12 }
 0x39d   :  { %1576 = vtanh.f32 %v916_v5  ;;  %vm911_vm6 = vcmp.eq.f32.partialorder %v910_v18, 8.507059e+37  ;;  %vm930_vm8 = vweird.f32 %v924_v12 }
 0x39f   :  { %v1571_v23 = vpop.eup %1570 }
 0x3a0   :  { %v880_v7 = vmul.f32 %v1571_v23, %v878_v22  ;;  %vm885_vm12 = vweird.f32 %v1571_v23 }
 0x3a1   :  { %v1573_v9 = vpop.eup %1572  ;;  %vm886_vm15 = vmor %vm884_vm13, %vm885_vm12 }
 0x3a2   :  { %v1575_v3 = vpop.eup %1574  ;;  %v881_v14 = vsub.f32 1.0, %v880_v7  ;;  %v902_v4 = vmul.f32 %v1573_v9, %v900_v24  ;;  %vm907_vm14 = vweird.f32 %v1573_v9  ;;  %v934_v24 = vand.u32 2147483647, %v924_v12 }
 0x3a3   :  { %v926_v11 = vmul.f32 %v1575_v3, %v924_v12  ;;  %vm908_vm5 = vmor %vm906_vm4, %vm907_vm14  ;;  %v1577_v48 = vpop.eup %1576  ;;  %vm931_vm7 = vweird.f32 %v1575_v3 }
 0x3a4   :  { %v903_v15 = vsub.f32 1.0, %v902_v4  ;;  %v882_v21 = vmul.f32 %v1571_v23, %v881_v14  ;;  %v913_v4 = vor.u32 1.1754944e-38, %v912_v17  ;;  %vm932_vm9 = vmor %vm930_vm8, %vm931_vm7  ;;  %vm935_vm10 = vcmp.eq.f32.partialorder %v934_v24, 8.507059e+37 }
 0x3a5   :  { %v927_v2 = vsub.f32 1.0, %v926_v11 }
 0x3a6   :  { %v883_v19 = vadd.f32 %v1571_v23, %v882_v21  ;;  %v904_v20 = vmul.f32 %v1573_v9, %v903_v15 }
 0x3a7   :  { %v928_v22 = vmul.f32 %v1575_v3, %v927_v2 }
 0x3a8   :  { %v887_v10 = vsel %vm886_vm15, %v1571_v23, %v883_v19  ;;  %v905_v7 = vadd.f32 %v1573_v9, %v904_v20  ;;  %v937_v23 = vor.u32 1.1754944e-38, %v936_v6 }
 0x3a9   :  { %v892_v1 = vsel %vm889_vm3, %v891_v13, %v887_v10  ;;  %v929_v16 = vadd.f32 %v1575_v3, %v928_v22 }
 0x3aa   :  { %v909_v14 = vsel %vm908_vm5, %v1573_v9, %v905_v7  ;;  %v941_v15 = vmul.f32 %v1577_v48, %v892_v1 }
 0x3ab   :  { %v914_v5 = vsel %vm911_vm6, %v913_v4, %v909_v14  ;;  %v933_v13 = vsel %vm932_vm9, %v1575_v3, %v929_v16 }
 0x3ac   :  { %v940_v21 = vmul.f32 %v914_v5, %v2465_v49  ;;  %v938_v9 = vsel %vm935_vm10, %v937_v23, %v933_v13 }
 0x3ae   :  { %v2536_v61 = vadd.f32 %v941_v15, %v940_v21 }
 0x3b0   :  { %1578 = vtanh.f32 %v2536_v61 }
 0x3b6   :  { %v1579_v18 = vpop.eup %1578 }
 0x3b7   :  { %v944_v11 = vmul.f32 %v1579_v18, %v938_v9 }
 0x3b9   :  { %946 = vst [vmem:[#allocation9 + $0x8] sm:$0x3] %v944_v11  ;;  %965 = vmatmul.f32.vlgmr.msrb.gmra.mxu0 %v944_v11  ;;  %985 = vmatmul.f32.vlgmr.msrb.gmra.mxu1 %v944_v11 }
 0x3ba   :  { %1005 = vmatmul.f32.vlgmr.msrb.gmra.mxu2 %v944_v11  ;;  %1025 = vmatmul.f32.vlgmr.msrb.gmra.mxu3 %v944_v11 }
 0x3bb   :  { %1281 = vmatpush.msrb.mxu0 %v2269_v36  ;;  %1301 = vmatpush.msrb.mxu1 %v2272_v25  ;;  %v2874_v36 = vld [vmem:[#allocation17_spill] sm:$0xff] }
 0x3bc   :  { %1321 = vmatpush.msrb.mxu2 %v2275_v26  ;;  %1341 = vmatpush.msrb.mxu3 %v2278_v27  ;;  %v2875_v25 = vld [vmem:[#allocation13_spill] sm:$0xff]  ;;  %v2876_v26 = vld [vmem:[#allocation14_spill] sm:$0xff] }
 0x3bd   :  { %1282 = vmatpush.msrb.mxu0 %v2281_v28  ;;  %1302 = vmatpush.msrb.mxu1 %v2284_v29  ;;  %v2877_v27 = vld [vmem:[#allocation21_spill] sm:$0xff]  ;;  %v2878_v28 = vld [vmem:[#allocation20_spill] sm:$0xff]  ;;  %v2879_v29 = vld [vmem:[#allocation15_spill] sm:$0xff] }
 0x3be   :  { %1322 = vmatpush.msrb.mxu2 %v2287_v30  ;;  %1342 = vmatpush.msrb.mxu3 %v2290_v31  ;;  %v2880_v30 = vld [vmem:[#allocation16_spill] sm:$0xff]  ;;  %v2881_v31 = vld [vmem:[#allocation25_spill] sm:$0xff] }
 0x3bf   :  { %1283 = vmatpush.msrb.mxu0 %v2293_v32  ;;  %1303 = vmatpush.msrb.mxu1 %v2296_v33  ;;  %v2882_v32 = vld [vmem:[#allocation24_spill] sm:$0xff]  ;;  %v2883_v33 = vld [vmem:[#allocation18_spill] sm:$0xff] }
 0x3c0   :  { %1323 = vmatpush.msrb.mxu2 %v2299_v34  ;;  %1343 = vmatpush.msrb.mxu3 %v2302_v37  ;;  %v2884_v34 = vld [vmem:[#allocation19_spill] sm:$0xff]  ;;  %v2885_v37 = vld [vmem:[#allocation29_spill] sm:$0xff] }
 0x3c1   :  { %1284 = vmatpush.msrb.mxu0 %v2305_v38  ;;  %1304 = vmatpush.msrb.mxu1 %v2308_v42  ;;  %v2886_v38 = vld [vmem:[#allocation28_spill] sm:$0xff]  ;;  %v2887_v42 = vld [vmem:[#allocation22_spill] sm:$0xff] }
 0x3c2   :  { %1324 = vmatpush.msrb.mxu2 %v2311_v44  ;;  %1344 = vmatpush.msrb.mxu3 %v2314_v35  ;;  %v2888_v44 = vld [vmem:[#allocation23_spill] sm:$0xff]  ;;  %v2889_v35 = vld [vmem:[#allocation33_spill] sm:$0xff] }
 0x3c3   :  { %1285 = vmatpush.msrb.mxu0 %v2317_v41  ;;  %1305 = vmatpush.msrb.mxu1 %v2320_v45  ;;  %v2890_v41 = vld [vmem:[#allocation32_spill] sm:$0xff]  ;;  %v2891_v45 = vld [vmem:[#allocation26_spill] sm:$0xff] }
 0x3c4   :  { %1325 = vmatpush.msrb.mxu2 %v2323_v46  ;;  %1345 = vmatpush.msrb.mxu3 %v2326_v55  ;;  %v2892_v46 = vld [vmem:[#allocation27_spill] sm:$0xff]  ;;  %v2893_v55 = vld [vmem:[#allocation37_spill] sm:$0xff] }
 0x3c5   :  { %1286 = vmatpush.msrb.mxu0 %v2329_v39  ;;  %1306 = vmatpush.msrb.mxu1 %v2332_v56  ;;  %v2894_v39 = vld [vmem:[#allocation36_spill] sm:$0xff]  ;;  %v2895_v56 = vld [vmem:[#allocation30_spill] sm:$0xff] }
 0x3c6   :  { %1326 = vmatpush.msrb.mxu2 %v2335_v58  ;;  %1346 = vmatpush.msrb.mxu3 %v2338_v0  ;;  %v2896_v58 = vld [vmem:[#allocation31_spill] sm:$0xff] }
 0x3c7   :  { %1287 = vmatpush.msrb.mxu0 %v2341_v54  ;;  %1307 = vmatpush.msrb.mxu1 %v2344_v63  ;;  %v2897_v0 = vld [vmem:[#allocation39_spill] sm:$0xff]  ;;  %v2898_v54 = vld [vmem:[#allocation38_spill] sm:$0xff] }
 0x3c8   :  { %1327 = vmatpush.msrb.mxu2 %v2347_v60  ;;  %1347 = vmatpush.msrb.mxu3 %v2350_v50  ;;  %v2899_v63 = vld [vmem:[#allocation34_spill] sm:$0xff]  ;;  %v2900_v60 = vld [vmem:[#allocation35_spill] sm:$0xff] }
 0x3c9   :  { %1288 = vmatpush.msrb.mxu0 %v2353_v40  ;;  %1308 = vmatpush.msrb.mxu1 %v2356_v51 }
 0x3ca   :  { %1328 = vmatpush.msrb.mxu2 %v2359_v62  ;;  %1348 = vmatpush.msrb.mxu3 %v2362_v57 }
 0x3cb   :  { %1289 = vmatpush.msrb.mxu0 %v2365_v47  ;;  %1309 = vmatpush.msrb.mxu1 %v2368_v43 }
 0x3cc   :  { %1329 = vmatpush.msrb.mxu2 %v2371_v53  ;;  %1349 = vmatpush.msrb.mxu3 %v2374_v52  ;;  %v948_v53 = vld [vmem:[#allocation4 + $0x28] sm:$0xff] }
 0x3cd   :  { %1290 = vmatpush.msrb.mxu0 %v2377_v59  ;;  %1310 = vmatpush.msrb.mxu1 %v2874_v36 }
 0x3ce   :  { %1330 = vmatpush.msrb.mxu2 %v2875_v25  ;;  %1350 = vmatpush.msrb.mxu3 %v2876_v26 }
 0x3cf   :  { %1291 = vmatpush.msrb.mxu0 %v2877_v27  ;;  %1311 = vmatpush.msrb.mxu1 %v2878_v28 }
 0x3d0   :  { %1331 = vmatpush.msrb.mxu2 %v2879_v29  ;;  %1351 = vmatpush.msrb.mxu3 %v2880_v30 }
 0x3d1   :  { %1292 = vmatpush.msrb.mxu0 %v2881_v31  ;;  %1312 = vmatpush.msrb.mxu1 %v2882_v32 }
 0x3d2   :  { %1332 = vmatpush.msrb.mxu2 %v2883_v33  ;;  %1352 = vmatpush.msrb.mxu3 %v2884_v34 }
 0x3d3   :  { %1293 = vmatpush.msrb.mxu0 %v2885_v37  ;;  %1313 = vmatpush.msrb.mxu1 %v2886_v38 }
 0x3d4   :  { %1333 = vmatpush.msrb.mxu2 %v2887_v42  ;;  %1353 = vmatpush.msrb.mxu3 %v2888_v44 }
 0x3d5   :  { %1294 = vmatpush.msrb.mxu0 %v2889_v35  ;;  %1314 = vmatpush.msrb.mxu1 %v2890_v41 }
 0x3d6   :  { %1334 = vmatpush.msrb.mxu2 %v2891_v45  ;;  %1354 = vmatpush.msrb.mxu3 %v2892_v46 }
 0x3d7   :  { %1295 = vmatpush.msrb.mxu0 %v2893_v55  ;;  %1315 = vmatpush.msrb.mxu1 %v2894_v39 }
 0x3d8   :  { %1335 = vmatpush.msrb.mxu2 %v2895_v56  ;;  %1355 = vmatpush.msrb.mxu3 %v2896_v58 }
 0x3d9   :  { %1296 = vmatpush.msrb.mxu0 %v2897_v0  ;;  %1316 = vmatpush.msrb.mxu1 %v2898_v54 }
 0x3da   :  { %1336 = vmatpush.msrb.mxu2 %v2899_v63  ;;  %1356 = vmatpush.msrb.mxu3 %v2900_v60 }
 0x436   :  { %v986_v50 = vpop.f32.mrf.mxu1  ;;  %v966_v43 = vpop.f32.mrf.mxu0 }
 0x437   :  { %v1033_v40 = vrot.slane %v986_v50, 6 }
 0x439   :  { %v1036_v52 = vsel %vm204_vm0, %v966_v43, %v1033_v40 }
 0x43d   :  { %v1006_v51 = vpop.f32.mrf.mxu2  ;;  %v1026_v62 = vpop.f32.mrf.mxu3 }
 0x43e   :  { %v1034_v57 = vrot.slane %v1006_v51, 4  ;;  %v1035_v47 = vrot.slane %v1026_v62, 2  ;;  %v1114_v62 = vld [vmem:[#allocation4 + $0x30] sm:$0xff] }
 0x440   :  { %v1037_v59 = vsel %vm206_vm1, %v1034_v57, %v1035_v47 }
 0x441   :  { %v1038_v49 = vsel %vm208_vm2, %v1036_v52, %v1037_v59 }
 0x442   :  { %v1040_v16 = vadd.f32 %v1038_v49, %v948_v53 }
 0x444   :  { %v1482_v48 = vmul.f32 -1.442695, %v1040_v16  ;;  %v1061_v1 = vrot.slane %v1040_v16, 2  ;;  %v1085_v2 = vrot.slane %v1040_v16, 6  ;;  %v1082_v22 = vrot.slane %v1040_v16, 4 }
 0x446   :  { %1580 = vpow2.f32 %v1482_v48  ;;  %v1483_v12 = vmul.f32 -1.442695, %v1061_v1  ;;  %v1484_v3 = vmul.f32 -1.442695, %v1085_v2 }
 0x448   :  { %1582 = vpow2.f32 %v1483_v12 }
 0x449   :  { %1584 = vpow2.f32 %v1484_v3 }
 0x44c   :  { %v1581_v8 = vpop.eup %1580 }
 0x44d   :  { %v1044_v17 = vadd.f32 1.0, %v1581_v8 }
 0x44e   :  { %v1583_v19 = vpop.eup %1582 }
 0x44f   :  { %v1585_v20 = vpop.eup %1584  ;;  %1586 = vrcp.f32 %v1044_v17  ;;  %v1066_v10 = vadd.f32 1.0, %v1583_v19  ;;  %v1056_v24 = vand.u32 2147483648, %v1044_v17  ;;  %v1054_v9 = vand.u32 2147483647, %v1044_v17 }
 0x450   :  { %v1090_v7 = vadd.f32 1.0, %v1585_v20  ;;  %vm1050_vm12 = vweird.f32 %v1044_v17 }
 0x451   :  { %1588 = vrcp.f32 %v1066_v10  ;;  %v1078_v11 = vand.u32 2147483648, %v1066_v10  ;;  %v1076_v26 = vand.u32 2147483647, %v1066_v10  ;;  %v1057_v27 = vor.u32 1.1754944e-38, %v1056_v24 }
 0x452   :  { %1590 = vrcp.f32 %v1090_v7  ;;  %vm1055_vm15 = vcmp.eq.f32.partialorder %v1054_v9, 8.507059e+37  ;;  %vm1072_vm3 = vweird.f32 %v1066_v10  ;;  %v1102_v45 = vand.u32 2147483648, %v1090_v7 }
 0x453   :  { %1592 = vtanh.f32 %v1082_v22  ;;  %v1079_v32 = vor.u32 1.1754944e-38, %v1078_v11  ;;  %vm1077_vm5 = vcmp.eq.f32.partialorder %v1076_v26, 8.507059e+37  ;;  %vm1096_vm7 = vweird.f32 %v1090_v7 }
 0x454   :  { %v1100_v46 = vand.u32 2147483647, %v1090_v7  ;;  %v1103_v39 = vor.u32 1.1754944e-38, %v1102_v45 }
 0x455   :  { %v1587_v4 = vpop.eup %1586 }
 0x456   :  { %v1046_v14 = vmul.f32 %v1587_v4, %v1044_v17  ;;  %vm1051_vm11 = vweird.f32 %v1587_v4  ;;  %vm1101_vm9 = vcmp.eq.f32.partialorder %v1100_v46, 8.507059e+37 }
 0x457   :  { %v1589_v5 = vpop.eup %1588  ;;  %vm1052_vm14 = vmor %vm1050_vm12, %vm1051_vm11 }
 0x458   :  { %v1591_v21 = vpop.eup %1590  ;;  %v1047_v15 = vsub.f32 1.0, %v1046_v14  ;;  %v1068_v6 = vmul.f32 %v1589_v5, %v1066_v10  ;;  %vm1073_vm13 = vweird.f32 %v1589_v5 }
 0x459   :  { %v1092_v13 = vmul.f32 %v1591_v21, %v1090_v7  ;;  %vm1074_vm4 = vmor %vm1072_vm3, %vm1073_vm13  ;;  %v1593_v34 = vpop.eup %1592  ;;  %vm1097_vm6 = vweird.f32 %v1591_v21 }
 0x45a   :  { %v1069_v23 = vsub.f32 1.0, %v1068_v6  ;;  %v1048_v18 = vmul.f32 %v1587_v4, %v1047_v15  ;;  %vm1098_vm8 = vmor %vm1096_vm7, %vm1097_vm6 }
 0x45b   :  { %v1093_v28 = vsub.f32 1.0, %v1092_v13 }
 0x45c   :  { %v1049_v36 = vadd.f32 %v1587_v4, %v1048_v18  ;;  %v1070_v25 = vmul.f32 %v1589_v5, %v1069_v23 }
 0x45d   :  { %v1094_v38 = vmul.f32 %v1591_v21, %v1093_v28 }
 0x45e   :  { %v1053_v29 = vsel %vm1052_vm14, %v1587_v4, %v1049_v36  ;;  %v1071_v30 = vadd.f32 %v1589_v5, %v1070_v25 }
 0x45f   :  { %v1058_v31 = vsel %vm1055_vm15, %v1057_v27, %v1053_v29  ;;  %v1095_v41 = vadd.f32 %v1591_v21, %v1094_v38 }
 0x460   :  { %v1075_v33 = vsel %vm1074_vm4, %v1589_v5, %v1071_v30  ;;  %v1107_v44 = vmul.f32 %v1593_v34, %v1058_v31 }
 0x461   :  { %v1080_v37 = vsel %vm1077_vm5, %v1079_v32, %v1075_v33  ;;  %v1099_v55 = vsel %vm1098_vm8, %v1591_v21, %v1095_v41 }
 0x462   :  { %v1106_v42 = vmul.f32 %v1080_v37, %v2536_v61  ;;  %v1104_v58 = vsel %vm1101_vm9, %v1103_v39, %v1099_v55 }
 0x464   :  { %v2607_v35 = vadd.f32 %v1107_v44, %v1106_v42 }
 0x466   :  { %1594 = vtanh.f32 %v2607_v35 }
 0x46c   :  { %v1595_v56 = vpop.eup %1594 }
 0x46d   :  { %v1110_v0 = vmul.f32 %v1595_v56, %v1104_v58 }
 0x46f   :  { %1112 = vst [vmem:[#allocation9 + $0xa] sm:$0x3] %v1110_v0  ;;  %1131 = vmatmul.f32.vlgmr.msra.gmra.mxu0 %v1110_v0  ;;  %1151 = vmatmul.f32.vlgmr.msra.gmra.mxu1 %v1110_v0 }
 0x470   :  { %1171 = vmatmul.f32.vlgmr.msra.gmra.mxu2 %v1110_v0  ;;  %1191 = vmatmul.f32.vlgmr.msra.gmra.mxu3 %v1110_v0 }
 0x4ec   :  { %v1152_v61 = vpop.f32.mrf.mxu1  ;;  %v1132_v51 = vpop.f32.mrf.mxu0 }
 0x4ed   :  { %v1199_v54 = vrot.slane %v1152_v61, 6 }
 0x4ef   :  { %v1202_v57 = vsel %vm204_vm0, %v1132_v51, %v1199_v54 }
 0x4f3   :  { %v1172_v63 = vpop.f32.mrf.mxu2  ;;  %v1192_v60 = vpop.f32.mrf.mxu3 }
 0x4f4   :  { %v1200_v50 = vrot.slane %v1172_v63, 4  ;;  %v1201_v40 = vrot.slane %v1192_v60, 2  ;;  %v1280_v60 = vld [vmem:[#allocation4 + $0x38] sm:$0xff] }
 0x4f6   :  { %v1203_v47 = vsel %vm206_vm1, %v1200_v50, %v1201_v40 }
 0x4f7   :  { %v1204_v43 = vsel %vm208_vm2, %v1202_v57, %v1203_v47 }
 0x4f8   :  { %v1206_v53 = vadd.f32 %v1204_v43, %v1114_v62 }
 0x4fa   :  { %v1485_v52 = vmul.f32 -1.442695, %v1206_v53  ;;  %v1227_v59 = vrot.slane %v1206_v53, 2  ;;  %v1251_v49 = vrot.slane %v1206_v53, 6  ;;  %v1248_v7 = vrot.slane %v1206_v53, 4 }
 0x4fc   :  { %1596 = vpow2.f32 %v1485_v52  ;;  %v1486_v16 = vmul.f32 -1.442695, %v1227_v59  ;;  %v1487_v48 = vmul.f32 -1.442695, %v1251_v49 }
 0x4fe   :  { %1598 = vpow2.f32 %v1486_v16 }
 0x4ff   :  { %1600 = vpow2.f32 %v1487_v48 }
 0x502   :  { %v1597_v1 = vpop.eup %1596 }
 0x503   :  { %v1210_v2 = vadd.f32 1.0, %v1597_v1 }
 0x504   :  { %v1599_v12 = vpop.eup %1598 }
 0x505   :  { %v1601_v3 = vpop.eup %1600  ;;  %1602 = vrcp.f32 %v1210_v2  ;;  %v1232_v8 = vadd.f32 1.0, %v1599_v12  ;;  %v1222_v22 = vand.u32 2147483648, %v1210_v2  ;;  %v1220_v24 = vand.u32 2147483647, %v1210_v2 }
 0x506   :  { %v1256_v17 = vadd.f32 1.0, %v1601_v3  ;;  %vm1216_vm11 = vweird.f32 %v1210_v2 }
 0x507   :  { %1604 = vrcp.f32 %v1232_v8  ;;  %v1244_v13 = vand.u32 2147483648, %v1232_v8  ;;  %v1242_v9 = vand.u32 2147483647, %v1232_v8  ;;  %v1223_v11 = vor.u32 1.1754944e-38, %v1222_v22 }
 0x508   :  { %1606 = vrcp.f32 %v1256_v17  ;;  %vm1221_vm14 = vcmp.eq.f32.partialorder %v1220_v24, 8.507059e+37  ;;  %vm1238_vm15 = vweird.f32 %v1232_v8  ;;  %v1268_v42 = vand.u32 2147483648, %v1256_v17 }
 0x509   :  { %1608 = vtanh.f32 %v1248_v7  ;;  %v1245_v28 = vor.u32 1.1754944e-38, %v1244_v13  ;;  %vm1243_vm4 = vcmp.eq.f32.partialorder %v1242_v9, 8.507059e+37  ;;  %vm1262_vm6 = vweird.f32 %v1256_v17 }
 0x50a   :  { %v1266_v44 = vand.u32 2147483647, %v1256_v17  ;;  %v1269_v45 = vor.u32 1.1754944e-38, %v1268_v42 }
 0x50b   :  { %v1603_v19 = vpop.eup %1602 }
 0x50c   :  { %v1212_v20 = vmul.f32 %v1603_v19, %v1210_v2  ;;  %vm1217_vm10 = vweird.f32 %v1603_v19  ;;  %vm1267_vm8 = vcmp.eq.f32.partialorder %v1266_v44, 8.507059e+37 }
 0x50d   :  { %v1605_v10 = vpop.eup %1604  ;;  %vm1218_vm13 = vmor %vm1216_vm11, %vm1217_vm10 }
 0x50e   :  { %v1607_v4 = vpop.eup %1606  ;;  %v1213_v14 = vsub.f32 1.0, %v1212_v20  ;;  %v1234_v5 = vmul.f32 %v1605_v10, %v1232_v8  ;;  %vm1239_vm12 = vweird.f32 %v1605_v10 }
 0x50f   :  { %v1258_v21 = vmul.f32 %v1607_v4, %v1256_v17  ;;  %vm1240_vm3 = vmor %vm1238_vm15, %vm1239_vm12  ;;  %v1609_v30 = vpop.eup %1608  ;;  %vm1263_vm5 = vweird.f32 %v1607_v4 }
 0x510   :  { %v1235_v15 = vsub.f32 1.0, %v1234_v5  ;;  %v1214_v6 = vmul.f32 %v1603_v19, %v1213_v14  ;;  %vm1264_vm7 = vmor %vm1262_vm6, %vm1263_vm5 }
 0x511   :  { %v1259_v36 = vsub.f32 1.0, %v1258_v21 }
 0x512   :  { %v1215_v23 = vadd.f32 %v1603_v19, %v1214_v6  ;;  %v1236_v18 = vmul.f32 %v1605_v10, %v1235_v15 }
 0x513   :  { %v1260_v32 = vmul.f32 %v1607_v4, %v1259_v36 }
 0x514   :  { %v1219_v25 = vsel %vm1218_vm13, %v1603_v19, %v1215_v23  ;;  %v1237_v26 = vadd.f32 %v1605_v10, %v1236_v18 }
 0x515   :  { %v1224_v27 = vsel %vm1221_vm14, %v1223_v11, %v1219_v25  ;;  %v1261_v38 = vadd.f32 %v1607_v4, %v1260_v32 }
 0x516   :  { %v1241_v29 = vsel %vm1240_vm3, %v1605_v10, %v1237_v26  ;;  %v1273_v34 = vmul.f32 %v1609_v30, %v1224_v27 }
 0x517   :  { %v1246_v31 = vsel %vm1243_vm4, %v1245_v28, %v1241_v29  ;;  %v1265_v41 = vsel %vm1264_vm7, %v1607_v4, %v1261_v38 }
 0x518   :  { %v1272_v33 = vmul.f32 %v1246_v31, %v2607_v35  ;;  %v1270_v55 = vsel %vm1267_vm8, %v1269_v45, %v1265_v41 }
 0x51a   :  { %v2614_v37 = vadd.f32 %v1273_v34, %v1272_v33 }
 0x51c   :  { %1610 = vtanh.f32 %v2614_v37 }
 0x522   :  { %v1611_v46 = vpop.eup %1610 }
 0x523   :  { %v1276_v39 = vmul.f32 %v1611_v46, %v1270_v55 }
 0x525   :  { %1278 = vst [vmem:[#allocation9 + $0xc] sm:$0x3] %v1276_v39  ;;  %1297 = vmatmul.f32.vlgmr.msrb.gmra.mxu0 %v1276_v39  ;;  %1317 = vmatmul.f32.vlgmr.msrb.gmra.mxu1 %v1276_v39 }
 0x526   :  { %1337 = vmatmul.f32.vlgmr.msrb.gmra.mxu2 %v1276_v39  ;;  %1357 = vmatmul.f32.vlgmr.msrb.gmra.mxu3 %v1276_v39 }
 0x5a2   :  { %v1318_v35 = vpop.f32.mrf.mxu1  ;;  %v1298_v63 = vpop.f32.mrf.mxu0 }
 0x5a3   :  { %v1365_v56 = vrot.slane %v1318_v35, 6 }
 0x5a5   :  { %v1368_v50 = vsel %vm204_vm0, %v1298_v63, %v1365_v56 }
 0x5a9   :  { %v1338_v58 = vpop.f32.mrf.mxu2  ;;  %v1358_v0 = vpop.f32.mrf.mxu3 }
 0x5aa   :  { %v1366_v61 = vrot.slane %v1338_v58, 4  ;;  %v1367_v54 = vrot.slane %v1358_v0, 2 }
 0x5ac   :  { %v1369_v40 = vsel %vm206_vm1, %v1366_v61, %v1367_v54 }
 0x5ad   :  { %v1370_v51 = vsel %vm208_vm2, %v1368_v50, %v1369_v40 }
 0x5ae   :  { %v1372_v62 = vadd.f32 %v1370_v51, %v1280_v60 }
 0x5b0   :  { %v1488_v57 = vmul.f32 -1.442695, %v1372_v62  ;;  %v1393_v47 = vrot.slane %v1372_v62, 2  ;;  %v1417_v43 = vrot.slane %v1372_v62, 6  ;;  %v1414_v19 = vrot.slane %v1372_v62, 4 }
 0x5b2   :  { %1612 = vpow2.f32 %v1488_v57  ;;  %v1489_v53 = vmul.f32 -1.442695, %v1393_v47  ;;  %v1490_v52 = vmul.f32 -1.442695, %v1417_v43 }
 0x5b4   :  { %1614 = vpow2.f32 %v1489_v53 }
 0x5b5   :  { %1616 = vpow2.f32 %v1490_v52 }
 0x5b8   :  { %v1613_v59 = vpop.eup %1612 }
 0x5b9   :  { %v1376_v49 = vadd.f32 1.0, %v1613_v59 }
 0x5ba   :  { %v1615_v16 = vpop.eup %1614 }
 0x5bb   :  { %v1617_v48 = vpop.eup %1616  ;;  %1618 = vrcp.f32 %v1376_v49  ;;  %v1398_v1 = vadd.f32 1.0, %v1615_v16  ;;  %v1388_v4 = vand.u32 2147483648, %v1376_v49  ;;  %v1386_v5 = vand.u32 2147483647, %v1376_v49 }
 0x5bc   :  { %v1422_v2 = vadd.f32 1.0, %v1617_v48  ;;  %vm1382_vm1 = vweird.f32 %v1376_v49 }
 0x5bd   :  { %1620 = vrcp.f32 %v1398_v1  ;;  %v1410_v15 = vand.u32 2147483648, %v1398_v1  ;;  %v1408_v24 = vand.u32 2147483647, %v1398_v1  ;;  %v1389_v23 = vor.u32 1.1754944e-38, %v1388_v4 }
 0x5be   :  { %1622 = vrcp.f32 %v1422_v2  ;;  %vm1387_vm10 = vcmp.eq.f32.partialorder %v1386_v5, 8.507059e+37  ;;  %vm1404_vm11 = vweird.f32 %v1398_v1  ;;  %v1434_v33 = vand.u32 2147483648, %v1422_v2 }
 0x5bf   :  { %1624 = vtanh.f32 %v1414_v19  ;;  %v1411_v36 = vor.u32 1.1754944e-38, %v1410_v15  ;;  %vm1409_vm13 = vcmp.eq.f32.partialorder %v1408_v24, 8.507059e+37  ;;  %vm1428_vm15 = vweird.f32 %v1422_v2 }
 0x5c0   :  { %v1432_v34 = vand.u32 2147483647, %v1422_v2  ;;  %v1435_v42 = vor.u32 1.1754944e-38, %v1434_v33 }
 0x5c1   :  { %v1619_v12 = vpop.eup %1618 }
 0x5c2   :  { %v1378_v3 = vmul.f32 %v1619_v12, %v1376_v49  ;;  %vm1383_vm0 = vweird.f32 %v1619_v12  ;;  %vm1433_vm4 = vcmp.eq.f32.partialorder %v1432_v34, 8.507059e+37 }
 0x5c3   :  { %v1621_v8 = vpop.eup %1620  ;;  %vm1384_vm2 = vmor %vm1382_vm1, %vm1383_vm0 }
 0x5c4   :  { %v1379_v17 = vsub.f32 1.0, %v1378_v3  ;;  %v1623_v20 = vpop.eup %1622  ;;  %v1400_v10 = vmul.f32 %v1621_v8, %v1398_v1  ;;  %vm1405_vm9 = vweird.f32 %v1621_v8 }
 0x5c5   :  { %v1424_v14 = vmul.f32 %v1623_v20, %v1422_v2  ;;  %vm1406_vm12 = vmor %vm1404_vm11, %vm1405_vm9  ;;  %v1625_v26 = vpop.eup %1624  ;;  %vm1429_vm14 = vweird.f32 %v1623_v20 }
 0x5c6   :  { %v1380_v7 = vmul.f32 %v1619_v12, %v1379_v17  ;;  %v1401_v22 = vsub.f32 1.0, %v1400_v10  ;;  %vm1430_vm3 = vmor %vm1428_vm15, %vm1429_vm14 }
 0x5c7   :  { %v1425_v18 = vsub.f32 1.0, %v1424_v14 }
 0x5c8   :  { %v1381_v21 = vadd.f32 %v1619_v12, %v1380_v7  ;;  %v1402_v6 = vmul.f32 %v1621_v8, %v1401_v22 }
 0x5c9   :  { %v1426_v28 = vmul.f32 %v1623_v20, %v1425_v18 }
 0x5ca   :  { %v1385_v13 = vsel %vm1384_vm2, %v1619_v12, %v1381_v21  ;;  %v1403_v9 = vadd.f32 %v1621_v8, %v1402_v6 }
 0x5cb   :  { %v1390_v11 = vsel %vm1387_vm10, %v1389_v23, %v1385_v13  ;;  %v1427_v32 = vadd.f32 %v1623_v20, %v1426_v28 }
 0x5cc   :  { %v1407_v25 = vsel %vm1406_vm12, %v1621_v8, %v1403_v9  ;;  %v1439_v30 = vmul.f32 %v1625_v26, %v1390_v11 }
 0x5cd   :  { %v1412_v27 = vsel %vm1409_vm13, %v1411_v36, %v1407_v25  ;;  %v1431_v38 = vsel %vm1430_vm3, %v1623_v20, %v1427_v32 }
 0x5ce   :  { %v1438_v29 = vmul.f32 %v1412_v27, %v2614_v37  ;;  %v1436_v44 = vsel %vm1433_vm4, %v1435_v42, %v1431_v38 }
 0x5d0   :  { %v1440_v31 = vadd.f32 %v1439_v30, %v1438_v29 }
 0x5d2   :  { %1626 = vtanh.f32 %v1440_v31  ;;  %1446 = vst [vmem:[#allocation3] sm:$0x3] %v1440_v31 }
 0x5d8   :  { %v1627_v37 = vpop.eup %1626 }
 0x5d9   :  { %v1442_v41 = vmul.f32 %v1627_v37, %v1436_v44 }
 0x5db   :  { %1445 = vst [vmem:[#allocation2] sm:$0x3] %v1442_v41 }
 0x5dc   :  { %1444 = vst [vmem:[#allocation9 + $0xe] sm:$0x3] %v1442_v41 }
 0x5dd   :  { %1459 = dma.vmem_to_hbm [thread:$0]  %s1452_s1, 256, %s1454_s25, [#allocation6], %s1775_s22, %s1775_s22, %s1778_s26  }
 0x5de   :  { %1768 = dma.done.wait [#allocation6], 256  }
 0x5df   :  { %1769 = vsyncadd [#allocation6], 4294967040 }
 0x5e0   :  { %1464 = vsyncpa [#allocation5], 1 }
 0x5e1   :  { %1465 = vsyncpa [#allocation8], 1 }
 0x5e2   :  { %1466 = vsyncpa [#allocation6], 1 }

</bundles_post_ra>
